<compile_context>
chip_gen: v7x
topology: tpu7x:2x2x1
jax: 0.10.0
libtpu: 0.0.40
codegen_flags: <defaults>
</compile_context>

<pallas_src>
import functools

import jax
import jax.numpy as jnp
from jax.experimental import pallas as pl
from jax.experimental.pallas import tpu as pltpu

LANE = 128          # lane width: last block dim multiple of this
BF16_SUBLANE = 16   # bf16 packs 16 rows per sublane group -> 16-align batch tiles
MIB = 1024 * 1024


def _round_up(x, m):
    return ((x + m - 1) // m) * m


def _vmem_capacity_bytes():
    try:
        return int(pltpu.get_tpu_info().vmem_capacity_bytes)
    except Exception:
        return 64 * MIB   # conservative: v7x per-TensorCore VMEM


# --------------------------------------------------------------------------------------
# Kernels
# --------------------------------------------------------------------------------------
def _resblock_kernel(x_ref, w1_ref, b1_ref, w2_ref, b2_ref, o_ref):
    """Resident-weight path: x block (TB, Dp); both (Dp, Dp) bf16 weights live in VMEM
    across all batch tiles (constant index_map, single-buffered)."""
    x32 = x_ref[...].astype(jnp.float32)                       # residual kept in f32
    h = jnp.dot(x_ref[...].astype(w1_ref.dtype), w1_ref[...],
                preferred_element_type=jnp.float32)
    h = jnp.maximum(h + b1_ref[...], 0.0)                      # (TB, Dp) f32
    y = jnp.dot(h.astype(w2_ref.dtype), w2_ref[...],
                preferred_element_type=jnp.float32)
    o_ref[...] = jnp.maximum(y + b2_ref[...] + x32, 0.0).astype(o_ref.dtype)


def _resblock_kernel_tiled(x_ref, w1_ref, b1_ref, w2_ref, b2_ref, o_ref, acc_ref):
    """K/N-tiled path: grid = (batch tiles, feature tiles).  Feature tile j is the
    N-slice of fc1 and the K-slice of fc2; fc2 output accumulates in f32 VMEM scratch."""
    j = pl.program_id(1)

    @pl.when(j == 0)
    def _():
        acc_ref[...] = jnp.zeros_like(acc_ref)

    h = jnp.dot(x_ref[...].astype(w1_ref.dtype), w1_ref[...],
                preferred_element_type=jnp.float32)            # (TB, TN)
    h = jnp.maximum(h + b1_ref[...], 0.0)
    acc_ref[...] += jnp.dot(h.astype(w2_ref.dtype), w2_ref[...],
                            preferred_element_type=jnp.float32)  # (TB, Dp)

    @pl.when(j == pl.num_programs(1) - 1)
    def _():
        y = acc_ref[...] + b2_ref[...] + x_ref[...].astype(jnp.float32)
        o_ref[...] = jnp.maximum(y, 0.0).astype(o_ref.dtype)


# --------------------------------------------------------------------------------------
# Wrappers
# --------------------------------------------------------------------------------------
def prepare_params(w1, b1, w2, b2):
    """One-time weight preprocessing (hoisted out of the per-call path): pad to
    lane-dense Dp and cast weights to bf16.  w1/w2 are (in, out) = torch weight^T."""
    D = w1.shape[0]
    Dp = _round_up(D, LANE)
    pd = Dp - D
    return dict(
        dim=D,
        dim_padded=Dp,
        w1=jnp.pad(w1, ((0, pd), (0, pd))).astype(jnp.bfloat16),
        w2=jnp.pad(w2, ((0, pd), (0, pd))).astype(jnp.bfloat16),
        b1=jnp.pad(b1, (0, pd)).reshape(1, Dp).astype(jnp.float32),
        b2=jnp.pad(b2, (0, pd)).reshape(1, Dp).astype(jnp.float32),
    )


def residual_block(x, params, *, block_b=256, feature_block=512,
                   io_dtype=jnp.bfloat16, force_tiled=False):
    """x: (B, D).  params: from prepare_params().  Returns (B, D) in io_dtype.
    Zero-padded feature columns stay exactly 0 through both matmuls, biases, residual
    and ReLU, so padding is semantics-preserving; padded batch rows are sliced off."""
    B, D = x.shape
    assert D == params["dim"]
    Dp = params["dim_padded"]
    w1, b1, w2, b2 = params["w1"], params["b1"], params["w2"], params["b2"]

    # Batch tile: as large as block_b allows, 16-aligned for bf16 row packing.
    TB = max(BF16_SUBLANE,
             min(_round_up(block_b, BF16_SUBLANE), _round_up(B, BF16_SUBLANE)))
    TB = (TB // BF16_SUBLANE) * BF16_SUBLANE
    Bp = _round_up(B, TB)

    io_bytes = jnp.dtype(io_dtype).itemsize
    act_blk = TB * Dp * io_bytes                     # one x or out block
    w_full = Dp * Dp * 2                             # one bf16 (Dp, Dp) weight
    bias_res = 2 * 2 * 8 * Dp * 4                    # 2 biases, sublane-padded, 2 bufs

    capacity = _vmem_capacity_bytes()
    budget = int(0.75 * capacity)
    headroom = 8 * MIB

    # Resident-weight path VMEM need: single- vs double-buffered weights.
    simple_single = 2 * w_full + bias_res + 2 * 2 * act_blk
    simple_double = 4 * w_full + bias_res + 2 * 2 * act_blk

    xp = jnp.pad(x, ((0, Bp - B), (0, Dp - D))).astype(io_dtype)
    out_shape = jax.ShapeDtypeStruct((Bp, Dp), io_dtype)

    use_tiled = force_tiled or (simple_single > budget)

    if not use_tiled:
        grid = (Bp // TB,)
        vmem_limit = min(simple_double + headroom, int(0.9 * capacity))

        def call(single_buffer_consts):
            if single_buffer_consts:
                # Constant operands never change -> 1 buffer (halves weight residency).
                cspec = functools.partial(pl.BlockSpec, pipeline_mode=pl.Buffered(1))
            else:
                cspec = pl.BlockSpec
            return pl.pallas_call(
                _resblock_kernel,
                out_shape=out_shape,
                grid_spec=pltpu.PrefetchScalarGridSpec(
                    num_scalar_prefetch=0,
                    grid=grid,
                    in_specs=[
                        pl.BlockSpec((TB, Dp), lambda i: (i, 0)),   # x: streamed per tile
                        cspec((Dp, Dp), lambda i: (0, 0)),          # w1: VMEM-resident
                        cspec((1, Dp), lambda i: (0, 0)),           # b1
                        cspec((Dp, Dp), lambda i: (0, 0)),          # w2: VMEM-resident
                        cspec((1, Dp), lambda i: (0, 0)),           # b2
                    ],
                    out_specs=pl.BlockSpec((TB, Dp), lambda i: (i, 0)),
                ),
                compiler_params=pltpu.CompilerParams(
                    dimension_semantics=("parallel",),   # batch tiles shard across TCs
                    vmem_limit_bytes=vmem_limit,
                ),
            )(xp, w1, b1, w2, b2)

        try:
            out = call(True)
        except Exception:
            out = call(False)   # fallback if pipeline_mode=pl.Buffered(1) is rejected
    else:
        # Feature tile TN must divide Dp (Dp is a multiple of 128, so this terminates).
        TN = min(Dp, _round_up(feature_block, LANE))
        while Dp % TN != 0:
            TN -= LANE
        grid = (Bp // TB, Dp // TN)
        tiled_need = (2 * 2 * (Dp * TN * 2)        # w1 + w2 tiles, double-buffered
                      + bias_res
                      + 2 * 2 * act_blk            # x + out, double-buffered
                      + TB * Dp * 4)               # f32 accumulator scratch
        vmem_limit = min(tiled_need + headroom, int(0.9 * capacity))
        out = pl.pallas_call(
            _resblock_kernel_tiled,
            out_shape=out_shape,
            grid_spec=pltpu.PrefetchScalarGridSpec(
                num_scalar_prefetch=0,
                grid=grid,
                in_specs=[
                    pl.BlockSpec((TB, Dp), lambda i, j: (i, 0)),   # x (reused across j)
                    pl.BlockSpec((Dp, TN), lambda i, j: (0, j)),   # w1 N-slice
                    pl.BlockSpec((1, TN), lambda i, j: (0, j)),    # b1 slice
                    pl.BlockSpec((TN, Dp), lambda i, j: (j, 0)),   # w2 K-slice
                    pl.BlockSpec((1, Dp), lambda i, j: (0, 0)),    # b2
                ],
                out_specs=pl.BlockSpec((TB, Dp), lambda i, j: (i, 0)),
                scratch_shapes=[pltpu.VMEM((TB, Dp), jnp.float32)],
            ),
            compiler_params=pltpu.CompilerParams(
                dimension_semantics=("parallel", "arbitrary"),
                vmem_limit_bytes=vmem_limit,
            ),
        )(xp, w1, b1, w2, b2)

    return out[:B, :D]


def reference(x, w1, b1, w2, b2, io_dtype=jnp.bfloat16):
    # Mirrors kernel numerics: bf16 activation stream + bf16 MXU operands, f32 accumulate
    # and f32 epilogue (differs from pure-f32 torch Linear only by ~bf16 epsilon).
    xs = x.astype(io_dtype).astype(jnp.float32)
    h = jnp.dot(xs.astype(jnp.bfloat16), w1.astype(jnp.bfloat16),
                preferred_element_type=jnp.float32) + b1
    h = jnp.maximum(h, 0.0)
    y = jnp.dot(h.astype(jnp.bfloat16), w2.astype(jnp.bfloat16),
                preferred_element_type=jnp.float32) + b2
    return jnp.maximum(y + xs, 0.0)


if __name__ == "__main__":
    key = jax.random.PRNGKey(0)

    def make_inputs(k, B, D):
        kx, kw1, kb1, kw2, kb2 = jax.random.split(k, 5)
        bound = 1.0 / (D ** 0.5)
        x = jax.random.normal(kx, (B, D), dtype=jnp.float32)
        # PyTorch Linear weight is (out, in); we store the transpose (in, out) directly.
        w1 = jax.random.uniform(kw1, (D, D), jnp.float32, -bound, bound)
        b1 = jax.random.uniform(kb1, (D,), jnp.float32, -bound, bound)
        w2 = jax.random.uniform(kw2, (D, D), jnp.float32, -bound, bound)
        b2 = jax.random.uniform(kb2, (D,), jnp.float32, -bound, bound)
        return x, w1, b1, w2, b2

    k1, k2 = jax.random.split(key)

    # 1) Resident-weight path: B=256, D=128, batch tile 128 -> 2-step "parallel" grid.
    x, w1, b1, w2, b2 = make_inputs(k1, 256, 128)
    params = prepare_params(w1, b1, w2, b2)           # one-time weight pad/cast
    out = jax.block_until_ready(residual_block(x, params, block_b=128))
    ref = jax.block_until_ready(reference(x, w1, b1, w2, b2))
    assert out.shape == x.shape
    assert jnp.allclose(out.astype(jnp.float32), ref, atol=2e-2, rtol=2e-2), \
        "resident-weight path mismatch vs reference"

    # 2) K/N-tiled (large-D) path, forced at a small size: B=128, D=256, feature tile 128.
    x, w1, b1, w2, b2 = make_inputs(k2, 128, 256)
    params = prepare_params(w1, b1, w2, b2)
    out = jax.block_until_ready(
        residual_block(x, params, block_b=128, feature_block=128, force_tiled=True))
    ref = jax.block_until_ready(reference(x, w1, b1, w2, b2))
    assert out.shape == x.shape
    assert jnp.allclose(out.astype(jnp.float32), ref, atol=2e-2, rtol=2e-2), \
        "tiled path mismatch vs reference"

    print("KERNEL_OK")
</pallas_src>

<mosaic_0001>
module attributes {stable_mosaic.version = 11 : i64} {
  func.func @_resblock_kernel(%arg0: i32, %arg1: memref<128x128xbf16, #tpu.memory_space<vmem>>, %arg2: memref<128x128xbf16, #tpu.memory_space<vmem>>, %arg3: memref<1x128xf32, #tpu.memory_space<vmem>>, %arg4: memref<128x128xbf16, #tpu.memory_space<vmem>>, %arg5: memref<1x128xf32, #tpu.memory_space<vmem>>, %arg6: memref<128x128xbf16, #tpu.memory_space<vmem>>) attributes {dimension_semantics = [#tpu.dimension_semantics<parallel>], iteration_bounds = array<i64: 2>, scalar_prefetch = 0 : i64, scratch_operands = 0 : i64, tpu.core_type = #tpu.core_type<tc>, window_params = [{transform_indices = @transform_0, window_bounds = array<i64: 128, 128>}, {pipeline_mode = #tpu.pipeline_mode<synchronous>, transform_indices = @transform_1, window_bounds = array<i64: 128, 128>}, {pipeline_mode = #tpu.pipeline_mode<synchronous>, transform_indices = @transform_2, window_bounds = array<i64: 1, 128>}, {pipeline_mode = #tpu.pipeline_mode<synchronous>, transform_indices = @transform_3, window_bounds = array<i64: 128, 128>}, {pipeline_mode = #tpu.pipeline_mode<synchronous>, transform_indices = @transform_4, window_bounds = array<i64: 1, 128>}, {transform_indices = @transform_5, window_bounds = array<i64: 128, 128>}]} {
    %c0 = arith.constant 0 : index
    %c0_0 = arith.constant 0 : index
    %0 = vector.load %arg1[%c0, %c0_0] : memref<128x128xbf16, #tpu.memory_space<vmem>>, vector<128x128xbf16>
    %1 = arith.extf %0 : vector<128x128xbf16> to vector<128x128xf32>
    %c0_1 = arith.constant 0 : index
    %c0_2 = arith.constant 0 : index
    %2 = vector.load %arg1[%c0_1, %c0_2] : memref<128x128xbf16, #tpu.memory_space<vmem>>, vector<128x128xbf16>
    %c0_3 = arith.constant 0 : index
    %c0_4 = arith.constant 0 : index
    %3 = vector.load %arg2[%c0_3, %c0_4] : memref<128x128xbf16, #tpu.memory_space<vmem>>, vector<128x128xbf16>
    %cst = arith.constant dense<0.000000e+00> : vector<128x128xf32>
    %4 = tpu.matmul %2, %3, %cst {dimension_numbers = #tpu.dot_dimension_numbers<[1], [0], [0], [1], [0, 0, 1, 1], [], []>} : vector<128x128xbf16>, vector<128x128xbf16>, vector<128x128xf32> -> vector<128x128xf32>
    %c0_5 = arith.constant 0 : index
    %c0_6 = arith.constant 0 : index
    %5 = vector.load %arg3[%c0_5, %c0_6] : memref<1x128xf32, #tpu.memory_space<vmem>>, vector<1x128xf32>
    %6 = vector.broadcast %5 : vector<1x128xf32> to vector<128x128xf32>
    %7 = arith.addf %4, %6 : vector<128x128xf32>
    %cst_7 = arith.constant 0.000000e+00 : f32
    %8 = vector.broadcast %cst_7 : f32 to vector<128x128xf32>
    %9 = arith.maximumf %7, %8 : vector<128x128xf32>
    %10 = arith.truncf %9 : vector<128x128xf32> to vector<128x128xbf16>
    %c0_8 = arith.constant 0 : index
    %c0_9 = arith.constant 0 : index
    %11 = vector.load %arg4[%c0_8, %c0_9] : memref<128x128xbf16, #tpu.memory_space<vmem>>, vector<128x128xbf16>
    %cst_10 = arith.constant dense<0.000000e+00> : vector<128x128xf32>
    %12 = tpu.matmul %10, %11, %cst_10 {dimension_numbers = #tpu.dot_dimension_numbers<[1], [0], [0], [1], [0, 0, 1, 1], [], []>} : vector<128x128xbf16>, vector<128x128xbf16>, vector<128x128xf32> -> vector<128x128xf32>
    %c0_11 = arith.constant 0 : index
    %c0_12 = arith.constant 0 : index
    %13 = vector.load %arg5[%c0_11, %c0_12] : memref<1x128xf32, #tpu.memory_space<vmem>>, vector<1x128xf32>
    %14 = vector.broadcast %13 : vector<1x128xf32> to vector<128x128xf32>
    %15 = arith.addf %12, %14 : vector<128x128xf32>
    %16 = arith.addf %15, %1 : vector<128x128xf32>
    %cst_13 = arith.constant 0.000000e+00 : f32
    %17 = vector.broadcast %cst_13 : f32 to vector<128x128xf32>
    %18 = arith.maximumf %16, %17 : vector<128x128xf32>
    %19 = arith.truncf %18 : vector<128x128xf32> to vector<128x128xbf16>
    %c0_14 = arith.constant 0 : index
    %c0_15 = arith.constant 0 : index
    %20 = vector.load %arg6[%c0_14, %c0_15] : memref<128x128xbf16, #tpu.memory_space<vmem>>, vector<128x128xbf16>
    tpu.vector_store %arg6[%c0_14, %c0_15], %19 {strides = array<i32>} : memref<128x128xbf16, #tpu.memory_space<vmem>>, vector<128x128xbf16>,
    return
  }
  func.func @transform_0(%arg0: i32) -> (i32, i32) {
    %c0_i32 = arith.constant 0 : i32
    %c0_i32_0 = arith.constant 0 : i32
    return %arg0, %c0_i32 : i32, i32
  }
  func.func @transform_1(%arg0: i32) -> (i32, i32) {
    %c0_i32 = arith.constant 0 : i32
    %c0_i32_0 = arith.constant 0 : i32
    %c0_i32_1 = arith.constant 0 : i32
    return %c0_i32, %c0_i32_0 : i32, i32
  }
  func.func @transform_2(%arg0: i32) -> (i32, i32) {
    %c0_i32 = arith.constant 0 : i32
    %c0_i32_0 = arith.constant 0 : i32
    %c0_i32_1 = arith.constant 0 : i32
    return %c0_i32, %c0_i32_0 : i32, i32
  }
  func.func @transform_3(%arg0: i32) -> (i32, i32) {
    %c0_i32 = arith.constant 0 : i32
    %c0_i32_0 = arith.constant 0 : i32
    %c0_i32_1 = arith.constant 0 : i32
    return %c0_i32, %c0_i32_0 : i32, i32
  }
  func.func @transform_4(%arg0: i32) -> (i32, i32) {
    %c0_i32 = arith.constant 0 : i32
    %c0_i32_0 = arith.constant 0 : i32
    %c0_i32_1 = arith.constant 0 : i32
    return %c0_i32, %c0_i32_0 : i32, i32
  }
  func.func @transform_5(%arg0: i32) -> (i32, i32) {
    %c0_i32 = arith.constant 0 : i32
    %c0_i32_0 = arith.constant 0 : i32
    return %arg0, %c0_i32 : i32, i32
  }
}

module attributes {stable_mosaic.version = 11 : i64} {
  func.func @_resblock_kernel(%arg0: i32, %arg1: memref<128x128xbf16, #tpu.memory_space<vmem>>, %arg2: memref<128x128xbf16, #tpu.memory_space<vmem>>, %arg3: memref<1x128xf32, #tpu.memory_space<vmem>>, %arg4: memref<128x128xbf16, #tpu.memory_space<vmem>>, %arg5: memref<1x128xf32, #tpu.memory_space<vmem>>, %arg6: memref<128x128xbf16, #tpu.memory_space<vmem>>) attributes {dimension_semantics = [#tpu.dimension_semantics<parallel>], iteration_bounds = array<i64: 2>, scalar_prefetch = 0 : i64, scratch_operands = 0 : i64, tpu.core_type = #tpu.core_type<tc>, window_params = [{transform_indices = @transform_0, window_bounds = array<i64: 128, 128>}, {pipeline_mode = #tpu.pipeline_mode<synchronous>, transform_indices = @transform_1, window_bounds = array<i64: 128, 128>}, {pipeline_mode = #tpu.pipeline_mode<synchronous>, transform_indices = @transform_2, window_bounds = array<i64: 1, 128>}, {pipeline_mode = #tpu.pipeline_mode<synchronous>, transform_indices = @transform_3, window_bounds = array<i64: 128, 128>}, {pipeline_mode = #tpu.pipeline_mode<synchronous>, transform_indices = @transform_4, window_bounds = array<i64: 1, 128>}, {transform_indices = @transform_5, window_bounds = array<i64: 128, 128>}]} {
    %c0 = arith.constant 0 : index
    %c0_0 = arith.constant 0 : index
    %0 = vector.load %arg1[%c0, %c0_0] : memref<128x128xbf16, #tpu.memory_space<vmem>>, vector<128x128xbf16>
    %1 = arith.extf %0 : vector<128x128xbf16> to vector<128x128xf32>
    %c0_1 = arith.constant 0 : index
    %c0_2 = arith.constant 0 : index
    %2 = vector.load %arg1[%c0_1, %c0_2] : memref<128x128xbf16, #tpu.memory_space<vmem>>, vector<128x128xbf16>
    %c0_3 = arith.constant 0 : index
    %c0_4 = arith.constant 0 : index
    %3 = vector.load %arg2[%c0_3, %c0_4] : memref<128x128xbf16, #tpu.memory_space<vmem>>, vector<128x128xbf16>
    %cst = arith.constant dense<0.000000e+00> : vector<128x128xf32>
    %4 = tpu.matmul %2, %3, %cst {dimension_numbers = #tpu.dot_dimension_numbers<[1], [0], [0], [1], [0, 0, 1, 1], [], []>} : vector<128x128xbf16>, vector<128x128xbf16>, vector<128x128xf32> -> vector<128x128xf32>
    %c0_5 = arith.constant 0 : index
    %c0_6 = arith.constant 0 : index
    %5 = vector.load %arg3[%c0_5, %c0_6] : memref<1x128xf32, #tpu.memory_space<vmem>>, vector<1x128xf32>
    %6 = vector.broadcast %5 : vector<1x128xf32> to vector<128x128xf32>
    %7 = arith.addf %4, %6 : vector<128x128xf32>
    %cst_7 = arith.constant 0.000000e+00 : f32
    %8 = vector.broadcast %cst_7 : f32 to vector<128x128xf32>
    %9 = arith.maximumf %7, %8 : vector<128x128xf32>
    %10 = arith.truncf %9 : vector<128x128xf32> to vector<128x128xbf16>
    %c0_8 = arith.constant 0 : index
    %c0_9 = arith.constant 0 : index
    %11 = vector.load %arg4[%c0_8, %c0_9] : memref<128x128xbf16, #tpu.memory_space<vmem>>, vector<128x128xbf16>
    %cst_10 = arith.constant dense<0.000000e+00> : vector<128x128xf32>
    %12 = tpu.matmul %10, %11, %cst_10 {dimension_numbers = #tpu.dot_dimension_numbers<[1], [0], [0], [1], [0, 0, 1, 1], [], []>} : vector<128x128xbf16>, vector<128x128xbf16>, vector<128x128xf32> -> vector<128x128xf32>
    %c0_11 = arith.constant 0 : index
    %c0_12 = arith.constant 0 : index
    %13 = vector.load %arg5[%c0_11, %c0_12] : memref<1x128xf32, #tpu.memory_space<vmem>>, vector<1x128xf32>
    %14 = vector.broadcast %13 : vector<1x128xf32> to vector<128x128xf32>
    %15 = arith.addf %12, %14 : vector<128x128xf32>
    %16 = arith.addf %15, %1 : vector<128x128xf32>
    %cst_13 = arith.constant 0.000000e+00 : f32
    %17 = vector.broadcast %cst_13 : f32 to vector<128x128xf32>
    %18 = arith.maximumf %16, %17 : vector<128x128xf32>
    %19 = arith.truncf %18 : vector<128x128xf32> to vector<128x128xbf16>
    %c0_14 = arith.constant 0 : index
    %c0_15 = arith.constant 0 : index
    %20 = vector.load %arg6[%c0_14, %c0_15] : memref<128x128xbf16, #tpu.memory_space<vmem>>, vector<128x128xbf16>
    tpu.vector_store %arg6[%c0_14, %c0_15], %19 {strides = array<i32>} : memref<128x128xbf16, #tpu.memory_space<vmem>>, vector<128x128xbf16>,
    return
  }
  func.func @transform_0(%arg0: i32) -> (i32, i32) {
    %c0_i32 = arith.constant 0 : i32
    %c0_i32_0 = arith.constant 0 : i32
    return %arg0, %c0_i32 : i32, i32
  }
  func.func @transform_1(%arg0: i32) -> (i32, i32) {
    %c0_i32 = arith.constant 0 : i32
    %c0_i32_0 = arith.constant 0 : i32
    %c0_i32_1 = arith.constant 0 : i32
    return %c0_i32, %c0_i32_0 : i32, i32
  }
  func.func @transform_2(%arg0: i32) -> (i32, i32) {
    %c0_i32 = arith.constant 0 : i32
    %c0_i32_0 = arith.constant 0 : i32
    %c0_i32_1 = arith.constant 0 : i32
    return %c0_i32, %c0_i32_0 : i32, i32
  }
  func.func @transform_3(%arg0: i32) -> (i32, i32) {
    %c0_i32 = arith.constant 0 : i32
    %c0_i32_0 = arith.constant 0 : i32
    %c0_i32_1 = arith.constant 0 : i32
    return %c0_i32, %c0_i32_0 : i32, i32
  }
  func.func @transform_4(%arg0: i32) -> (i32, i32) {
    %c0_i32 = arith.constant 0 : i32
    %c0_i32_0 = arith.constant 0 : i32
    %c0_i32_1 = arith.constant 0 : i32
    return %c0_i32, %c0_i32_0 : i32, i32
  }
  func.func @transform_5(%arg0: i32) -> (i32, i32) {
    %c0_i32 = arith.constant 0 : i32
    %c0_i32_0 = arith.constant 0 : i32
    return %arg0, %c0_i32 : i32, i32
  }
}

</mosaic_0001>

<bundles_post_ra>
// kernel: tpu_custom_call.1
= control target key start
LH: loop header
LB: loop body
LE: loop exit
PB: predicated region body
PF: predicated region fallthrough
CT: control target
= control target key end

     0   :  { %10 = vsyncpa [#allocation3], 0  ;;  %s1785_s0 = inlined_call_operand.hbm [shape: bf16[256,128], index: 0, kind: input, shape index: {}]   ;;  %s1786_s1 = inlined_call_operand.hbm [shape: bf16[128,128], index: 1, kind: input, shape index: {}]   ;;  %s1787_s2 = inlined_call_operand.vmem [shape: f32[1,128], index: 2, kind: input, shape index: {}]   ;;  %s1788_s3 = inlined_call_operand.hbm [shape: bf16[128,128], index: 3, kind: input, shape index: {}]   ;;  %s1789_s4 = inlined_call_operand.vmem [shape: f32[1,128], index: 4, kind: input, shape index: {}]   ;;  %s1790_s5 = inlined_call_operand.hbm [shape: bf16[256,128], index: 5, kind: output, shape index: {}]  }
   0x1   :  { %12 = vsyncpa [#allocation3 + $0x1], 0 }
   0x2   :  { %13 = vsyncpa [#allocation6], 0 }
   0x3   :  { %14 = vsyncpa [#allocation4], 0 }
   0x4   :  { %16 = vsyncpa [#allocation4 + $0x1], 0  ;;  %s1453_s18 = smov 0   ;;  %s1455_s19 = smov 0  }
   0x5   :  { %s1457_s20 = smov 0   ;;  %s1459_s21 = smov 0  }
   0x6 LB: > { %s1474_s22 = sadd.s32 4294967295, %s1413_s21   ;;  %s933_s23 = sadd.s32 4294967294, %s1413_s21   ;;  %s1413_s21 = sphi %s1459_s21, %s1810_s21   ;;  %s1409_s20 = sphi %s1457_s20, %s1809_s20   ;;  %s1405_s19 = sphi %s1455_s19, %s1808_s19   ;;  %s1401_s18 = sphi %s1453_s18, %s1807_s18  }
   0x7   : > { %p42_p0 = scmp.ne.s32.totalorder %s1405_s19, %s1401_s18  ;;  %p1791_p1 = scmp.eq.s32.totalorder %s1474_s22, 0 }
   0x8   : > { %p156_p3 = scmp.eq.s32.totalorder %s933_s23, 1  ;;  %p934_p5 = scmp.ge.s32.totalorder %s1413_s21, 1 }
   0x9   : > { %p1483_p4 = por %p1791_p1, %p42_p0  ;;  %p163_p7 = scmp.lt.s32.totalorder %s1413_s21, 3 }
   0xa   : > { %p1488_p6 = por %p156_p3, %p42_p0  ;;  %s1415_s27 = smov [#allocation5]  }
   0xb   : > { %s1794_s24 = scalar_select %p1483_p4, 1, 0 }
   0xc   : > { %s1795_s25 = scalar_select %p1488_p6, 1, 0 }
   0xd   : > { %p1493_p8 = pnand %p934_p5, %p163_p7  ;;  %s175_s28 = sshll.u32 %s1415_s27, 4  ;;  %s1497_s28 = int_to_ptr.vmem [resolvable:$true] %s175_s28 }
   0xe   : > { %s1416_s30 = smov [#allocation7]   ;;  %s1257_s9 = scalar_lea.hbm %s1786_s1, 1024 }
   0xf   : > { %p1166_p9 = pneg %p1493_p8  ;;  %s191_s6 = sshll.u32 %s1416_s30, 4  ;;  %s1508_s6 = int_to_ptr.vmem [resolvable:$true] %s191_s6 }
  0x10   : > { %p1258_p12 = scmp.ne.s32.totalorder %s1786_s1, %s1257_s9  ;;  %p1264_p5 = scmp.lt.u32.totalorder %s1257_s9, %s1786_s1 }
  0x11   : > { %p1504_p11 = pnand %p1166_p9, %p1791_p1 }
  0x13   : > { %p1259_p13 = pneg %p1504_p11 }
  0x15   : > { %p1260_p0 = pnand %p1259_p13, %p1258_p12 }
  0x17   : > { %p1261_p3 = pneg %p1260_p0 }
  0x19   : > { %p1266_p7 = pnand %p1264_p5, %p1261_p3 }
  0x1b   : > { %1269 = shalt.err (!%p1266_p7)
}
  0x1c   : > { %s1270_s14 = scalar_lea.vmem %s1497_s28, 1024  ;;  %p1278_p2 = scmp.lt.s32.totalorder %s1497_s28, %s1497_s28 }
  0x1d   : > { %p1271_p9 = scmp.ne.s32.totalorder %s1497_s28, %s1270_s14  ;;  %p1279_p12 = scmp.lt.s32.totalorder %s1270_s14, %s1270_s14 }
  0x1f   : > { %p1273_p10 = pnand %p1271_p9, %p1259_p13  ;;  %p1280_p0 = por %p1279_p12, %p1278_p2 }
  0x21   : > { %p1274_p1 = pneg %p1273_p10 }
  0x23   : > { %p1281_p6 = pnand %p1280_p0, %p1274_p1 }
  0x25   : > { %1284 = shalt.err (!%p1281_p6)
}
  0x26   : > { %s1417_s15 = smov 64   ;;  %s1418_s16 = smov 4  }
  0x27   : > { %1169 = dma.hbm_to_vmem [thread:$0]  (!%p1504_p11), %s1786_s1, 1024, %s1497_s28, [#allocation6], %s1417_s15, %s1417_s15, %s1418_s16  }
  0x28   : > { %s1285_s7 = scalar_lea.hbm %s1788_s3, 1024 }
  0x29   : > { %p1286_p1 = scmp.ne.s32.totalorder %s1788_s3, %s1285_s7  ;;  %p1292_p10 = scmp.lt.u32.totalorder %s1285_s7, %s1788_s3 }
  0x2b   : > { %p1288_p2 = pnand %p1286_p1, %p1259_p13 }
  0x2d   : > { %p1289_p6 = pneg %p1288_p2 }
  0x2f   : > { %p1294_p3 = pnand %p1292_p10, %p1289_p6 }
  0x31   : > { %1297 = shalt.err (!%p1294_p3)
}
  0x32   : > { %s1298_s28 = scalar_lea.vmem %s1508_s6, 1024  ;;  %p1306_p12 = scmp.lt.s32.totalorder %s1508_s6, %s1508_s6 }
  0x33   : > { %p1299_p5 = scmp.ne.s32.totalorder %s1508_s6, %s1298_s28  ;;  %p1307_p0 = scmp.lt.s32.totalorder %s1298_s28, %s1298_s28 }
  0x35   : > { %p1301_p7 = pnand %p1299_p5, %p1259_p13  ;;  %p1308_p1 = por %p1307_p0, %p1306_p12 }
  0x37   : > { %p1302_p9 = pneg %p1301_p7 }
  0x39   : > { %p1309_p2 = pnand %p1308_p1, %p1302_p9 }
  0x3b   : > { %1312 = shalt.err (!%p1309_p2)
}
  0x3c   : > { %1172 = dma.hbm_to_vmem [thread:$0]  (!%p1504_p11), %s1788_s3, 1024, %s1508_s6, [#allocation6], %s1417_s15, %s1417_s15, %s1418_s16  }
  0x3d   : > { %s1569_s29 = sadd.s32 1, %s1413_s21   ;;  %s29_s14 = sadd.s32 1, %s1409_s20 }
  0x3e   : > { %s26_s17 = ssub.s32 %s1413_s21, %s1569_s29  ;;  %p36_p13 = scmp.ne.s32.totalorder %s1409_s20, %s1405_s19 }
  0x3f   : > { %p27_p6 = scmp.eq.s32.totalorder %s26_s17, 0  ;;  %p37_p10 = scmp.eq.s32.totalorder %s1413_s21, 0 }
  0x40   : > { %p1798_p3 = scmp.eq.s32.totalorder %s1474_s22, 1  ;;  %p1183_p7 = scmp.lt.s32.totalorder %s1413_s21, 2 }
  0x41   : > { %s1585_s27 = scalar_select %p27_p6, %s1409_s20, %s29_s14  }
  0x42   : > { %p1579_p5 = por %p1798_p3, %p36_p13  ;;  %p38_p9 = por %p37_p10, %p36_p13 }
  0x43   : > { %s208_s30 = sand.u32 1, %s1409_s20   ;;  %s993_s6 = sshll.u32 %s1413_s21, 10 }
  0x44   : > { %s1799_s23 = scalar_select %p1579_p5, 1, 0 }
  0x45   : > { %s938_s7 = sshll.u32 %s208_s30, 6  ;;  %s1592_s10 = scalar_lea.hbm %s1785_s0, %s993_s6 }
  0x46   : > { %s212_s11 = scalar_lea.vmem [#allocation2], %s938_s7  ;;  %p1596_p11 = pnand %p1183_p7, %p38_p9 }
  0x47   : > { %s219_s28 = sshll.u32 %s212_s11, 4  ;;  %s1600_s13 = scalar_lea.sflag [#allocation3], %s208_s30  ;;  %s1594_s28 = int_to_ptr.vmem [resolvable:$true] %s219_s28 }
  0x48   : > { %s1313_s14 = scalar_lea.hbm %s1592_s10, 1024  ;;  %p1315_p0 = pneg %p1596_p11 }
  0x49   : > { %p1314_p12 = scmp.ne.s32.totalorder %s1592_s10, %s1313_s14  ;;  %s1318_s6 = scalar_lea.hbm %s1785_s0, 2048 }
  0x4a   : > { %p1319_p13 = scmp.lt.u32.totalorder %s1592_s10, %s1785_s0  ;;  %p1320_p6 = scmp.lt.u32.totalorder %s1318_s6, %s1313_s14 }
  0x4b   : > { %p1316_p1 = pnand %p1315_p0, %p1314_p12  ;;  %p1322_p3 = scmp.lt.u32.totalorder %s1313_s14, %s1592_s10 }
  0x4c   : > { %p1321_p10 = por %p1320_p6, %p1319_p13 }
  0x4d   : > { %p1317_p2 = pneg %p1316_p1 }
  0x4e   : > { %p1323_p7 = por %p1322_p3, %p1321_p10 }
  0x50   : > { %p1324_p9 = pnand %p1323_p7, %p1317_p2 }
  0x52   : > { %1327 = shalt.err (!%p1324_p9)
}
  0x53   : > { %s1328_s30 = scalar_lea.vmem %s1594_s28, 1024  ;;  %s1419_s11 = smov [#allocation2]  }
  0x54   : > { %p1329_p12 = scmp.ne.s32.totalorder %s1594_s28, %s1328_s30  ;;  %s1333_s17 = sshll.u32 %s1419_s11, 4  ;;  %s1334_s17 = int_to_ptr.vmem [resolvable:$false] %s1333_s17 }
  0x55   : > { %s1335_s7 = scalar_lea.vmem %s1334_s17, 2048  ;;  %p1336_p4 = scmp.lt.s32.totalorder %s1594_s28, %s1334_s17 }
  0x56   : > { %p1331_p1 = pnand %p1329_p12, %p1315_p0  ;;  %p1337_p13 = scmp.lt.s32.totalorder %s1335_s7, %s1328_s30 }
  0x58   : > { %p1332_p5 = pneg %p1331_p1  ;;  %p1338_p6 = por %p1337_p13, %p1336_p4 }
  0x5a   : > { %p1339_p10 = pnand %p1338_p6, %p1332_p5 }
  0x5c   : > { %1342 = shalt.err (!%p1339_p10)
}
  0x5d   : > { %1176 = dma.hbm_to_vmem [thread:$0]  (!%p1596_p11), %s1592_s10, 1024, %s1594_s28, %s1600_s13, %s1417_s15, %s1417_s15, %s1418_s16  }
  0x5e   : > { %231 = sbr.rel (%p1493_p8) target bundleno = 622 (0x26e), region = 40  ;;  %s1634_s14 = sand.u32 (!%p1493_p8), 1, %s1405_s19  }
  0x5f   : > { %s942_s6 = sshll.u32 (!%p1493_p8), %s1634_s14, 6  ;;  %s234_s8 = scalar_lea.sflag (!%p1493_p8), [#allocation3], %s1634_s14 }
  0x60   : > { %s1640_s12 = scalar_lea.vmem (!%p1493_p8), [#allocation2], %s942_s6  ;;  %p1801_p4 = scmp.ne.s32.totalorder (!%p1493_p8), %s1794_s24, 0 }
  0x65   : > { %1388 = dma.done.wait (%p1801_p4), %s234_s8, 1024  }
  0x66   : > { %1390 = vsyncadd (%p1801_p4), %s234_s8, 4294966272  ;;  %p1802_p5 = scmp.eq.s32.totalorder %s1474_s22, 0 }
  0x68   : > { %1392 = dma.done.wait (%p1802_p5), [#allocation6], 2048   ;;  %p1803_p8 = pmov %p1802_p5 }
  0x69   : > { %v1225_v0 = vld [vmem:[#allocation5] sm:$0xff]   ;;  %v1226_v1 = vld [vmem:[#allocation5 + $0x8] sm:$0xff]   ;;  %v1227_v2 = vld [vmem:[#allocation5 + $0x10] sm:$0xff]   ;;  %s1706_s10 = scalar_lea.vmem [#allocation8], %s942_s6  ;;  %s1010_s28 = sshll.u32 %s1474_s22, 10 }
  0x6a   : > { %1394 = vsyncadd (%p1803_p8), [#allocation6], 4294965248  ;;  %1090 = vmatprep.subr.bf16.mxu0 %v1225_v0  ;;  %v1228_v3 = vld [vmem:[#allocation5 + $0x18] sm:$0xff]   ;;  %v1651_v4 = vld [vmem:[%s1640_s12] sm:$0xff]   ;;  %s841_s13 = sshll.u32 %s1706_s10, 4  ;;  %s1737_s11 = scalar_lea.hbm %s1790_s5, %s1010_s28  ;;  %s1739_s13 = int_to_ptr.vmem [resolvable:$true] %s841_s13 }
  0x6b   : > { %1091 = vmatpush3.bf16.msra.mxu0 %v1225_v0  ;;  %v1229_v5 = vld [vmem:[#allocation5 + $0x20] sm:$0xff]   ;;  %1106 = vmatprep.mubr.bf16.mxu0 %v1651_v4  ;;  %v1242_v7 = vld [vmem:[#allocation7 + $0x8] sm:$0xff]   ;;  %v1243_v8 = vld [vmem:[#allocation7 + $0x10] sm:$0xff]   ;;  %s828_s22 = scalar_lea.sflag [#allocation4], %s1634_s14  ;;  %s1343_s17 = scalar_lea.vmem %s1739_s13, 1024 }
  0x6c   : > { %1092 = vmatprep.subr.bf16.mxu0 %v1226_v1  ;;  %v1241_v6 = vld [vmem:[#allocation7] sm:$0xff]   ;;  %v1230_v9 = vld [vmem:[#allocation5 + $0x28] sm:$0xff]   ;;  %v1244_v10 = vld [vmem:[#allocation7 + $0x18] sm:$0xff]   ;;  %p1344_p11 = scmp.ne.s32.totalorder %s1739_s13, %s1343_s17  ;;  %p1804_p0 = scmp.ne.s32.totalorder %s1799_s23, 0 }
  0x6d   : > { %1122 = vmatprep.subr.bf16.mxu1 %v1241_v6  ;;  %v1231_v11 = vld [vmem:[#allocation5 + $0x30] sm:$0xff]   ;;  %v1245_v12 = vld [vmem:[#allocation7 + $0x20] sm:$0xff]   ;;  %v1232_v13 = vld [vmem:[#allocation5 + $0x38] sm:$0xff]   ;;  %s1420_s7 = smov [#allocation8]  }
  0x6e   : > { %1123 = vmatpush3.bf16.msra.mxu1 %v1241_v6  ;;  %v1655_v14 = vld [vmem:[%s1640_s12 + $0x8] sm:$0xff]   ;;  %v1658_v16 = vld [vmem:[%s1640_s12 + $0x10] sm:$0xff]   ;;  %v1663_v17 = vld [vmem:[%s1640_s12 + $0x18] sm:$0xff]   ;;  %p1345_p2 = pnand %p1344_p11, %p1804_p0  ;;  %s1347_s6 = sshll.u32 %s1420_s7, 4  ;;  %s1348_s6 = int_to_ptr.vmem [resolvable:$false] %s1347_s6 }
  0x6f   : > { %1093 = vmatpush3.bf16.msra.mxu0 %v1226_v1  ;;  %1124 = vmatprep.subr.bf16.mxu1 %v1242_v7  ;;  %v1246_v15 = vld [vmem:[#allocation7 + $0x28] sm:$0xff]   ;;  %v1666_v18 = vld [vmem:[%s1640_s12 + $0x20] sm:$0xff]   ;;  %v1674_v20 = vld [vmem:[%s1640_s12 + $0x30] sm:$0xff]   ;;  %s1349_s8 = scalar_lea.vmem %s1348_s6, 2048  ;;  %p1350_p7 = scmp.lt.s32.totalorder %s1739_s13, %s1348_s6 }
  0x70   : > { %1094 = vmatprep.subr.bf16.mxu0 %v1227_v2  ;;  %v1671_v19 = vld [vmem:[%s1640_s12 + $0x28] sm:$0xff]   ;;  %v1679_v21 = vld [vmem:[%s1640_s12 + $0x38] sm:$0xff]   ;;  %v1247_v22 = vld [vmem:[#allocation7 + $0x30] sm:$0xff]   ;;  %p1346_p3 = pneg %p1345_p2  ;;  %p1351_p9 = scmp.lt.s32.totalorder %s1349_s8, %s1343_s17 }
  0x71   : > { %v1248_v23 = vld [vmem:[#allocation7 + $0x38] sm:$0xff]   ;;  %v946_v24 = vld [vmem:[%s1787_s2] ss:$0 sm:$0xff] }
  0x72   : > { %1125 = vmatpush3.bf16.msra.mxu1 %v1242_v7  ;;  %p1352_p12 = por %p1351_p9, %p1350_p7 }
  0x73   : > { %1095 = vmatpush3.bf16.msra.mxu0 %v1227_v2  ;;  %1126 = vmatprep.subr.bf16.mxu1 %v1243_v8 }
  0x74   : > { %1096 = vmatprep.subr.bf16.mxu0 %v1228_v3  ;;  %p1353_p1 = pnand %p1352_p12, %p1346_p3 }
  0x76   : > { %1127 = vmatpush3.bf16.msra.mxu1 %v1243_v8 }
  0x77   : > { %1097 = vmatpush3.bf16.msra.mxu0 %v1228_v3  ;;  %1128 = vmatprep.subr.bf16.mxu1 %v1244_v10 }
  0x78   : > { %1098 = vmatprep.subr.bf16.mxu0 %v1229_v5 }
  0x7a   : > { %1129 = vmatpush3.bf16.msra.mxu1 %v1244_v10 }
  0x7b   : > { %1099 = vmatpush3.bf16.msra.mxu0 %v1229_v5  ;;  %1130 = vmatprep.subr.bf16.mxu1 %v1245_v12 }
  0x7c   : > { %1100 = vmatprep.subr.bf16.mxu0 %v1230_v9 }
  0x7e   : > { %1131 = vmatpush3.bf16.msra.mxu1 %v1245_v12 }
  0x7f   : > { %1101 = vmatpush3.bf16.msra.mxu0 %v1230_v9  ;;  %1132 = vmatprep.subr.bf16.mxu1 %v1246_v15 }
  0x80   : > { %1102 = vmatprep.subr.bf16.mxu0 %v1231_v11 }
  0x82   : > { %1133 = vmatpush3.bf16.msra.mxu1 %v1246_v15 }
  0x83   : > { %1103 = vmatpush3.bf16.msra.mxu0 %v1231_v11  ;;  %1134 = vmatprep.subr.bf16.mxu1 %v1247_v22 }
  0x84   : > { %1104 = vmatprep.subr.bf16.mxu0 %v1232_v13 }
  0x86   : > { %1135 = vmatpush3.bf16.msra.mxu1 %v1247_v22 }
  0x87   : > { %1105 = vmatpush3.bf16.msra.mxu0 %v1232_v13  ;;  %1136 = vmatprep.subr.bf16.mxu1 %v1248_v23 }
  0x8a   : > { %1107 = vmatmul.mubr.bf16.vlgmr.msra.gmra.mrb[0].mxu0 %v1655_v14  ;;  %1137 = vmatpush3.bf16.msra.mxu1 %v1248_v23 }
  0x8b   : > { %1110 = vmatprep.mubr.bf16.mxu0 %v1658_v16 }
  0x92   : > { %1111 = vmatmul.mubr.bf16.gmra.mrb[4].mxu0 %v1663_v17 }
  0x93   : > { %1114 = vmatprep.mubr.bf16.mxu0 %v1666_v18 }
  0x9a   : > { %1115 = vmatmul.mubr.bf16.gmra.mrb[8].mxu0 %v1671_v19 }
  0x9b   : > { %1118 = vmatprep.mubr.bf16.mxu0 %v1674_v20 }
  0xa2   : > { %1119 = vmatmul.mubr.bf16.gmra.mrb[12].mxu0 %v1679_v21 }
 0x15d   : > { %v1108_v25 = vpop.f32.mrb[0].mxu0 }
 0x15e   : > { %v469_v26 = vadd.f32 %v1108_v25, %v946_v24  ;;  %v460_v27 = vpop.f32.mrb[1].mxu0 }
 0x15f   : > { %v461_v28 = vadd.f32 %v946_v24, %v460_v27  ;;  %v1109_v29 = vpop.f32.mrb[2].mxu0  ;;  %v293_v27 = vunpack.c.l.bf16 %v1655_v14 }
 0x160   : > { %v472_v30 = vadd.f32 %v1109_v29, %v946_v24  ;;  %v463_v31 = vpop.f32.mrb[3].mxu0  ;;  %v525_v33 = vmax.f32 %v469_v26, 0.0  ;;  %v1688_v26 = vld [vmem:[%s1789_s4] ss:$0 sm:$0xff] }
 0x161   : > { %v464_v32 = vadd.f32 %v946_v24, %v463_v31  ;;  %v523_v35 = vmax.f32 %v461_v28, 0.0  ;;  %v291_v28 = vunpack.c.l.bf16 %v1651_v4  ;;  %v294_v31 = vunpack.c.h.bf16 %v1655_v14 }
 0x162   : > { %v526_v34 = vmax.f32 %v472_v30, 0.0 }
 0x163   : > { %v524_v36 = vmax.f32 %v464_v32, 0.0  ;;  %v292_v32 = vunpack.c.h.bf16 %v1651_v4 }
 0x164   : > { %v540_v37 = vpack.c.bf16 %v526_v34, %v525_v33 }
 0x165   : > { %v1112_v38 = vpop.f32.mrb[4].mxu0  ;;  %v539_v39 = vpack.c.bf16 %v524_v36, %v523_v35 }
 0x166   : > { %v485_v40 = vadd.f32 %v1112_v38, %v946_v24  ;;  %v476_v41 = vpop.f32.mrb[5].mxu0 }
 0x167   : > { %v477_v42 = vadd.f32 %v946_v24, %v476_v41  ;;  %v1113_v43 = vpop.f32.mrb[6].mxu0  ;;  %1138 = vmatprep.mubr.bf16.mxu1 %v539_v39 }
 0x168   : > { %v488_v44 = vadd.f32 %v1113_v43, %v946_v24  ;;  %v479_v45 = vpop.f32.mrb[7].mxu0  ;;  %1139 = vmatmul.mubr.bf16.vlgmr.msra.gmra.mrb[0].mxu1 %v540_v37  ;;  %v529_v47 = vmax.f32 %v485_v40, 0.0 }
 0x169   : > { %v480_v46 = vadd.f32 %v946_v24, %v479_v45  ;;  %v527_v49 = vmax.f32 %v477_v42, 0.0 }
 0x16a   : > { %v530_v48 = vmax.f32 %v488_v44, 0.0  ;;  %v297_v44 = vunpack.c.l.bf16 %v1663_v17 }
 0x16b   : > { %v528_v50 = vmax.f32 %v480_v46, 0.0  ;;  %v295_v46 = vunpack.c.l.bf16 %v1658_v16 }
 0x16c   : > { %v542_v51 = vpack.c.bf16 %v530_v48, %v529_v47 }
 0x16d   : > { %v541_v52 = vpack.c.bf16 %v528_v50, %v527_v49  ;;  %v1116_v53 = vpop.f32.mrb[8].mxu0  ;;  %v298_v50 = vunpack.c.h.bf16 %v1663_v17 }
 0x16e   : > { %v501_v54 = vadd.f32 %v1116_v53, %v946_v24  ;;  %v492_v55 = vpop.f32.mrb[9].mxu0 }
 0x16f   : > { %v493_v56 = vadd.f32 %v946_v24, %v492_v55  ;;  %v1117_v57 = vpop.f32.mrb[10].mxu0  ;;  %1142 = vmatprep.mubr.bf16.mxu1 %v541_v52 }
 0x170   : > { %v504_v58 = vadd.f32 %v1117_v57, %v946_v24  ;;  %v495_v59 = vpop.f32.mrb[11].mxu0  ;;  %1143 = vmatmul.mubr.bf16.gmra.mrb[4].mxu1 %v542_v51  ;;  %v533_v61 = vmax.f32 %v501_v54, 0.0  ;;  %v296_v54 = vunpack.c.h.bf16 %v1658_v16  ;;  %v301_v16 = vunpack.c.l.bf16 %v1671_v19 }
 0x171   : > { %v496_v60 = vadd.f32 %v946_v24, %v495_v59  ;;  %v531_v63 = vmax.f32 %v493_v56, 0.0 }
 0x172   : > { %v534_v62 = vmax.f32 %v504_v58, 0.0 }
 0x173   : > { %v532_v0 = vmax.f32 %v496_v60, 0.0 }
 0x174   : > { %v544_v1 = vpack.c.bf16 %v534_v62, %v533_v61 }
 0x175   : > { %v543_v2 = vpack.c.bf16 %v532_v0, %v531_v63  ;;  %v1120_v3 = vpop.f32.mrb[12].mxu0 }
 0x176   : > { %v517_v5 = vadd.f32 %v1120_v3, %v946_v24  ;;  %v508_v6 = vpop.f32.mrb[13].mxu0 }
 0x177   : > { %v509_v7 = vadd.f32 %v946_v24, %v508_v6  ;;  %v1121_v8 = vpop.f32.mrb[14].mxu0  ;;  %1146 = vmatprep.mubr.bf16.mxu1 %v543_v2  ;;  %v299_v2 = vunpack.c.l.bf16 %v1666_v18 }
 0x178   : > { %v520_v9 = vadd.f32 %v1121_v8, %v946_v24  ;;  %v511_v10 = vpop.f32.mrb[15].mxu0  ;;  %1147 = vmatmul.mubr.bf16.gmra.mrb[8].mxu1 %v544_v1  ;;  %v537_v12 = vmax.f32 %v517_v5, 0.0 }
 0x179   : > { %v512_v11 = vadd.f32 %v946_v24, %v511_v10  ;;  %v535_v15 = vmax.f32 %v509_v7, 0.0  ;;  %v302_v7 = vunpack.c.h.bf16 %v1671_v19 }
 0x17a   : > { %v538_v13 = vmax.f32 %v520_v9, 0.0 }
 0x17b   : > { %v536_v22 = vmax.f32 %v512_v11, 0.0  ;;  %v300_v11 = vunpack.c.h.bf16 %v1666_v18 }
 0x17c   : > { %v546_v23 = vpack.c.bf16 %v538_v13, %v537_v12 }
 0x17d   : > { %v545_v25 = vpack.c.bf16 %v536_v22, %v535_v15 }
 0x17f   : > { %1150 = vmatprep.mubr.bf16.mxu1 %v545_v25 }
 0x180   : > { %1151 = vmatmul.mubr.bf16.gmra.mrb[12].mxu1 %v546_v23 }
 0x23b   : > { %v1140_v29 = vpop.f32.mrb[0].mxu1 }
 0x23c   : > { %v661_v24 = vadd.f32 %v1140_v29, %v1688_v26  ;;  %v652_v30 = vpop.f32.mrb[1].mxu1  ;;  %v305_v29 = vunpack.c.l.bf16 %v1679_v21 }
 0x23d   : > { %v653_v33 = vadd.f32 %v1688_v26, %v652_v30  ;;  %v1141_v34 = vpop.f32.mrb[2].mxu1 }
 0x23e   : > { %v717_v35 = vadd.f32 %v661_v24, %v293_v27  ;;  %v664_v36 = vadd.f32 %v1141_v34, %v1688_v26  ;;  %v655_v37 = vpop.f32.mrb[3].mxu1 }
 0x23f   : > { %v715_v38 = vadd.f32 %v653_v33, %v291_v28  ;;  %v656_v39 = vadd.f32 %v1688_v26, %v655_v37 }
 0x240   : > { %v718_v40 = vadd.f32 %v664_v36, %v294_v31  ;;  %v733_v42 = vmax.f32 %v717_v35, 0.0  ;;  %v303_v31 = vunpack.c.l.bf16 %v1674_v20  ;;  %v306_v35 = vunpack.c.h.bf16 %v1679_v21 }
 0x241   : > { %v716_v41 = vadd.f32 %v656_v39, %v292_v32  ;;  %v731_v14 = vmax.f32 %v715_v38, 0.0  ;;  %v304_v39 = vunpack.c.h.bf16 %v1674_v20 }
 0x242   : > { %v734_v43 = vmax.f32 %v718_v40, 0.0 }
 0x243   : > { %v732_v45 = vmax.f32 %v716_v41, 0.0  ;;  %v1144_v4 = vpop.f32.mrb[4].mxu1 }
 0x244   : > { %v1019_v47 = vpack.c.bf16 %v734_v43, %v733_v42  ;;  %v677_v48 = vadd.f32 %v1144_v4, %v1688_v26  ;;  %v668_v49 = vpop.f32.mrb[5].mxu1 }
 0x245   : > { %v1014_v51 = vpack.c.bf16 %v732_v45, %v731_v14  ;;  %v669_v52 = vadd.f32 %v1688_v26, %v668_v49  ;;  %v1145_v53 = vpop.f32.mrb[6].mxu1 }
 0x246   : > { %1051 = vst [vmem:[%s1706_s10 + $0x8] sm:$0xff] %v1019_v47   ;;  %v721_v55 = vadd.f32 %v677_v48, %v297_v44  ;;  %v680_v56 = vadd.f32 %v1145_v53, %v1688_v26  ;;  %v671_v57 = vpop.f32.mrb[7].mxu1 }
 0x247   : > { %1015 = vst [vmem:[%s1706_s10] sm:$0xff] %v1014_v51   ;;  %v719_v58 = vadd.f32 %v669_v52, %v295_v46  ;;  %v672_v17 = vadd.f32 %v1688_v26, %v671_v57 }
 0x248   : > { %v722_v59 = vadd.f32 %v680_v56, %v298_v50  ;;  %v737_v61 = vmax.f32 %v721_v55, 0.0 }
 0x249   : > { %v720_v60 = vadd.f32 %v672_v17, %v296_v54  ;;  %v735_v63 = vmax.f32 %v719_v58, 0.0 }
 0x24a   : > { %v738_v62 = vmax.f32 %v722_v59, 0.0 }
 0x24b   : > { %v736_v0 = vmax.f32 %v720_v60, 0.0  ;;  %v1148_v1 = vpop.f32.mrb[8].mxu1 }
 0x24c   : > { %v1029_v3 = vpack.c.bf16 %v738_v62, %v737_v61  ;;  %v693_v5 = vadd.f32 %v1148_v1, %v1688_v26  ;;  %v684_v6 = vpop.f32.mrb[9].mxu1 }
 0x24d   : > { %v1024_v8 = vpack.c.bf16 %v736_v0, %v735_v63  ;;  %v685_v9 = vadd.f32 %v1688_v26, %v684_v6  ;;  %v1149_v10 = vpop.f32.mrb[10].mxu1 }
 0x24e   : > { %1053 = vst [vmem:[%s1706_s10 + $0x18] sm:$0xff] %v1029_v3   ;;  %v725_v12 = vadd.f32 %v693_v5, %v301_v16  ;;  %v696_v13 = vadd.f32 %v1149_v10, %v1688_v26  ;;  %v687_v15 = vpop.f32.mrb[11].mxu1 }
 0x24f   : > { %1052 = vst [vmem:[%s1706_s10 + $0x10] sm:$0xff] %v1024_v8   ;;  %v723_v22 = vadd.f32 %v685_v9, %v299_v2  ;;  %v688_v23 = vadd.f32 %v1688_v26, %v687_v15 }
 0x250   : > { %v726_v25 = vadd.f32 %v696_v13, %v302_v7  ;;  %v741_v28 = vmax.f32 %v725_v12, 0.0 }
 0x251   : > { %v724_v27 = vadd.f32 %v688_v23, %v300_v11  ;;  %v739_v24 = vmax.f32 %v723_v22, 0.0 }
 0x252   : > { %v742_v19 = vmax.f32 %v726_v25, 0.0 }
 0x253   : > { %v740_v30 = vmax.f32 %v724_v27, 0.0  ;;  %v1152_v18 = vpop.f32.mrb[12].mxu1 }
 0x254   : > { %v1039_v32 = vpack.c.bf16 %v742_v19, %v741_v28  ;;  %v709_v33 = vadd.f32 %v1152_v18, %v1688_v26  ;;  %v700_v34 = vpop.f32.mrb[13].mxu1 }
 0x255   : > { %v1034_v36 = vpack.c.bf16 %v740_v30, %v739_v24  ;;  %v701_v37 = vadd.f32 %v1688_v26, %v700_v34  ;;  %v1153_v38 = vpop.f32.mrb[14].mxu1 }
 0x256   : > { %1055 = vst [vmem:[%s1706_s10 + $0x28] sm:$0xff] %v1039_v32   ;;  %v729_v40 = vadd.f32 %v709_v33, %v305_v29  ;;  %v712_v41 = vadd.f32 %v1153_v38, %v1688_v26  ;;  %v703_v42 = vpop.f32.mrb[15].mxu1 }
 0x257   : > { %1054 = vst [vmem:[%s1706_s10 + $0x20] sm:$0xff] %v1034_v36   ;;  %v727_v43 = vadd.f32 %v701_v37, %v303_v31  ;;  %v704_v44 = vadd.f32 %v1688_v26, %v703_v42 }
 0x258   : > { %v730_v14 = vadd.f32 %v712_v41, %v306_v35  ;;  %v745_v45 = vmax.f32 %v729_v40, 0.0 }
 0x259   : > { %v728_v21 = vadd.f32 %v704_v44, %v304_v39  ;;  %v743_v20 = vmax.f32 %v727_v43, 0.0 }
 0x25a   : > { %v746_v4 = vmax.f32 %v730_v14, 0.0 }
 0x25b   : > { %v744_v46 = vmax.f32 %v728_v21, 0.0 }
 0x25c   : > { %v1049_v47 = vpack.c.bf16 %v746_v4, %v745_v45 }
 0x25d   : > { %v1044_v26 = vpack.c.bf16 %v744_v46, %v743_v20 }
 0x25e   : > { %1057 = vst [vmem:[%s1706_s10 + $0x38] sm:$0xff] %v1049_v47  }
 0x25f   : > { %1056 = vst [vmem:[%s1706_s10 + $0x30] sm:$0xff] %v1044_v26  }
 0x260   : > { %1356 = shalt.err (!%p1353_p1)
}
 0x261   : > { %s1357_s12 = scalar_lea.hbm %s1737_s11, 1024  ;;  %s1361_s15 = scalar_lea.hbm %s1790_s5, 2048 }
 0x262   : > { %p1358_p13 = scmp.ne.s32.totalorder %s1737_s11, %s1357_s12  ;;  %p1362_p4 = scmp.lt.u32.totalorder %s1737_s11, %s1790_s5 }
 0x263   : > { %p1363_p5 = scmp.lt.u32.totalorder %s1361_s15, %s1357_s12  ;;  %p1365_p11 = scmp.lt.u32.totalorder %s1357_s12, %s1737_s11 }
 0x264   : > { %p1359_p6 = pnand %p1358_p13, %p1804_p0 }
 0x265   : > { %p1364_p8 = por %p1363_p5, %p1362_p4 }
 0x266   : > { %p1360_p10 = pneg %p1359_p6 }
 0x267   : > { %p1366_p2 = por %p1365_p11, %p1364_p8 }
 0x269   : > { %p1367_p3 = pnand %p1366_p2, %p1360_p10 }
 0x26b   : > { %1370 = shalt.err (!%p1367_p3)
}
 0x26c   : > { %s1421_s28 = smov 64   ;;  %s1422_s9 = smov 4  }
 0x26d   : > { %1164 = dma.vmem_to_hbm [thread:$0]  (%p1804_p0), %s1739_s13, 1024, %s1737_s11, %s828_s22, %s1421_s28, %s1421_s28, %s1422_s9  }
 0x26e PF: > { %s856_s30 = sand.u32 1, %s1401_s18   ;;  %p1805_p7 = scmp.ne.s32.totalorder %s1795_s25, 0 }
 0x26f   : > { %p1806_p9 = scmp.ge.s32.totalorder %s1413_s21, 2  ;;  %s857_s17 = scalar_lea.sflag [#allocation4], %s856_s30 }
 0x271   : > { %p1178_p12 = pnand %p1806_p9, %p1805_p7 }
 0x273   : > { %1396 = dma.done.wait (!%p1178_p12), %s857_s17, 1024  }
 0x274   : > { %1398 = vsyncadd (!%p1178_p12), %s857_s17, 4294966272  ;;  %p19_p1 = scmp.ge.s32.totalorder %s1569_s29, 4   ;;  %s1807_s18 = smov %s1405_s19 }
 0x275   : > { %s1808_s19 = smov %s1409_s20  ;;  %s1809_s20 = smov %s1585_s27 }
 0x276   : > { %s1810_s21 = smov %s1569_s29  ;;  %21 = sbr.rel (!%p19_p1) target bundleno = 6 (0x6), region = 93 }
 0x27d   :  { %862 = vsyncpa [#allocation3], 1 }
 0x27e   :  { %864 = vsyncpa [#allocation3 + $0x1], 1 }
 0x27f   :  { %865 = vsyncpa [#allocation6], 1 }
 0x280   :  { %866 = vsyncpa [#allocation4], 1 }
 0x281   :  { %868 = vsyncpa [#allocation4 + $0x1], 1 }

// kernel: tpu_custom_call.1
= control target key start
LH: loop header
LB: loop body
LE: loop exit
PB: predicated region body
PF: predicated region fallthrough
CT: control target
= control target key end

     0   :  { %10 = vsyncpa [#allocation3], 0  ;;  %s1785_s0 = inlined_call_operand.hbm [shape: bf16[256,128], index: 0, kind: input, shape index: {}]   ;;  %s1786_s1 = inlined_call_operand.hbm [shape: bf16[128,128], index: 1, kind: input, shape index: {}]   ;;  %s1787_s2 = inlined_call_operand.vmem [shape: f32[1,128], index: 2, kind: input, shape index: {}]   ;;  %s1788_s3 = inlined_call_operand.hbm [shape: bf16[128,128], index: 3, kind: input, shape index: {}]   ;;  %s1789_s4 = inlined_call_operand.vmem [shape: f32[1,128], index: 4, kind: input, shape index: {}]   ;;  %s1790_s5 = inlined_call_operand.hbm [shape: bf16[256,128], index: 5, kind: output, shape index: {}]  }
   0x1   :  { %12 = vsyncpa [#allocation3 + $0x1], 0 }
   0x2   :  { %13 = vsyncpa [#allocation6], 0 }
   0x3   :  { %14 = vsyncpa [#allocation4], 0 }
   0x4   :  { %16 = vsyncpa [#allocation4 + $0x1], 0  ;;  %s1453_s18 = smov 0   ;;  %s1455_s19 = smov 0  }
   0x5   :  { %s1457_s20 = smov 0   ;;  %s1459_s21 = smov 0  }
   0x6 LB: > { %s1474_s22 = sadd.s32 4294967295, %s1413_s21   ;;  %s933_s23 = sadd.s32 4294967294, %s1413_s21   ;;  %s1413_s21 = sphi %s1459_s21, %s1810_s21   ;;  %s1409_s20 = sphi %s1457_s20, %s1809_s20   ;;  %s1405_s19 = sphi %s1455_s19, %s1808_s19   ;;  %s1401_s18 = sphi %s1453_s18, %s1807_s18  }
   0x7   : > { %p42_p0 = scmp.ne.s32.totalorder %s1405_s19, %s1401_s18  ;;  %p1791_p1 = scmp.eq.s32.totalorder %s1474_s22, 0 }
   0x8   : > { %p156_p3 = scmp.eq.s32.totalorder %s933_s23, 1  ;;  %p934_p5 = scmp.ge.s32.totalorder %s1413_s21, 1 }
   0x9   : > { %p1483_p4 = por %p1791_p1, %p42_p0  ;;  %p163_p7 = scmp.lt.s32.totalorder %s1413_s21, 3 }
   0xa   : > { %p1488_p6 = por %p156_p3, %p42_p0  ;;  %s1415_s27 = smov [#allocation5]  }
   0xb   : > { %s1794_s24 = scalar_select %p1483_p4, 1, 0 }
   0xc   : > { %s1795_s25 = scalar_select %p1488_p6, 1, 0 }
   0xd   : > { %p1493_p8 = pnand %p934_p5, %p163_p7  ;;  %s175_s28 = sshll.u32 %s1415_s27, 4  ;;  %s1497_s28 = int_to_ptr.vmem [resolvable:$true] %s175_s28 }
   0xe   : > { %s1416_s30 = smov [#allocation7]   ;;  %s1257_s9 = scalar_lea.hbm %s1786_s1, 1024 }
   0xf   : > { %p1166_p9 = pneg %p1493_p8  ;;  %s191_s6 = sshll.u32 %s1416_s30, 4  ;;  %s1508_s6 = int_to_ptr.vmem [resolvable:$true] %s191_s6 }
  0x10   : > { %p1258_p12 = scmp.ne.s32.totalorder %s1786_s1, %s1257_s9  ;;  %p1264_p5 = scmp.lt.u32.totalorder %s1257_s9, %s1786_s1 }
  0x11   : > { %p1504_p11 = pnand %p1166_p9, %p1791_p1 }
  0x13   : > { %p1259_p13 = pneg %p1504_p11 }
  0x15   : > { %p1260_p0 = pnand %p1259_p13, %p1258_p12 }
  0x17   : > { %p1261_p3 = pneg %p1260_p0 }
  0x19   : > { %p1266_p7 = pnand %p1264_p5, %p1261_p3 }
  0x1b   : > { %1269 = shalt.err (!%p1266_p7)
}
  0x1c   : > { %s1270_s14 = scalar_lea.vmem %s1497_s28, 1024  ;;  %p1278_p2 = scmp.lt.s32.totalorder %s1497_s28, %s1497_s28 }
  0x1d   : > { %p1271_p9 = scmp.ne.s32.totalorder %s1497_s28, %s1270_s14  ;;  %p1279_p12 = scmp.lt.s32.totalorder %s1270_s14, %s1270_s14 }
  0x1f   : > { %p1273_p10 = pnand %p1271_p9, %p1259_p13  ;;  %p1280_p0 = por %p1279_p12, %p1278_p2 }
  0x21   : > { %p1274_p1 = pneg %p1273_p10 }
  0x23   : > { %p1281_p6 = pnand %p1280_p0, %p1274_p1 }
  0x25   : > { %1284 = shalt.err (!%p1281_p6)
}
  0x26   : > { %s1417_s15 = smov 64   ;;  %s1418_s16 = smov 4  }
  0x27   : > { %1169 = dma.hbm_to_vmem [thread:$0]  (!%p1504_p11), %s1786_s1, 1024, %s1497_s28, [#allocation6], %s1417_s15, %s1417_s15, %s1418_s16  }
  0x28   : > { %s1285_s7 = scalar_lea.hbm %s1788_s3, 1024 }
  0x29   : > { %p1286_p1 = scmp.ne.s32.totalorder %s1788_s3, %s1285_s7  ;;  %p1292_p10 = scmp.lt.u32.totalorder %s1285_s7, %s1788_s3 }
  0x2b   : > { %p1288_p2 = pnand %p1286_p1, %p1259_p13 }
  0x2d   : > { %p1289_p6 = pneg %p1288_p2 }
  0x2f   : > { %p1294_p3 = pnand %p1292_p10, %p1289_p6 }
  0x31   : > { %1297 = shalt.err (!%p1294_p3)
}
  0x32   : > { %s1298_s28 = scalar_lea.vmem %s1508_s6, 1024  ;;  %p1306_p12 = scmp.lt.s32.totalorder %s1508_s6, %s1508_s6 }
  0x33   : > { %p1299_p5 = scmp.ne.s32.totalorder %s1508_s6, %s1298_s28  ;;  %p1307_p0 = scmp.lt.s32.totalorder %s1298_s28, %s1298_s28 }
  0x35   : > { %p1301_p7 = pnand %p1299_p5, %p1259_p13  ;;  %p1308_p1 = por %p1307_p0, %p1306_p12 }
  0x37   : > { %p1302_p9 = pneg %p1301_p7 }
  0x39   : > { %p1309_p2 = pnand %p1308_p1, %p1302_p9 }
  0x3b   : > { %1312 = shalt.err (!%p1309_p2)
}
  0x3c   : > { %1172 = dma.hbm_to_vmem [thread:$0]  (!%p1504_p11), %s1788_s3, 1024, %s1508_s6, [#allocation6], %s1417_s15, %s1417_s15, %s1418_s16  }
  0x3d   : > { %s1569_s29 = sadd.s32 1, %s1413_s21   ;;  %s29_s14 = sadd.s32 1, %s1409_s20 }
  0x3e   : > { %s26_s17 = ssub.s32 %s1413_s21, %s1569_s29  ;;  %p36_p13 = scmp.ne.s32.totalorder %s1409_s20, %s1405_s19 }
  0x3f   : > { %p27_p6 = scmp.eq.s32.totalorder %s26_s17, 0  ;;  %p37_p10 = scmp.eq.s32.totalorder %s1413_s21, 0 }
  0x40   : > { %p1798_p3 = scmp.eq.s32.totalorder %s1474_s22, 1  ;;  %p1183_p7 = scmp.lt.s32.totalorder %s1413_s21, 2 }
  0x41   : > { %s1585_s27 = scalar_select %p27_p6, %s1409_s20, %s29_s14  }
  0x42   : > { %p1579_p5 = por %p1798_p3, %p36_p13  ;;  %p38_p9 = por %p37_p10, %p36_p13 }
  0x43   : > { %s208_s30 = sand.u32 1, %s1409_s20   ;;  %s993_s6 = sshll.u32 %s1413_s21, 10 }
  0x44   : > { %s1799_s23 = scalar_select %p1579_p5, 1, 0 }
  0x45   : > { %s938_s7 = sshll.u32 %s208_s30, 6  ;;  %s1592_s10 = scalar_lea.hbm %s1785_s0, %s993_s6 }
  0x46   : > { %s212_s11 = scalar_lea.vmem [#allocation2], %s938_s7  ;;  %p1596_p11 = pnand %p1183_p7, %p38_p9 }
  0x47   : > { %s219_s28 = sshll.u32 %s212_s11, 4  ;;  %s1600_s13 = scalar_lea.sflag [#allocation3], %s208_s30  ;;  %s1594_s28 = int_to_ptr.vmem [resolvable:$true] %s219_s28 }
  0x48   : > { %s1313_s14 = scalar_lea.hbm %s1592_s10, 1024  ;;  %p1315_p0 = pneg %p1596_p11 }
  0x49   : > { %p1314_p12 = scmp.ne.s32.totalorder %s1592_s10, %s1313_s14  ;;  %s1318_s6 = scalar_lea.hbm %s1785_s0, 2048 }
  0x4a   : > { %p1319_p13 = scmp.lt.u32.totalorder %s1592_s10, %s1785_s0  ;;  %p1320_p6 = scmp.lt.u32.totalorder %s1318_s6, %s1313_s14 }
  0x4b   : > { %p1316_p1 = pnand %p1315_p0, %p1314_p12  ;;  %p1322_p3 = scmp.lt.u32.totalorder %s1313_s14, %s1592_s10 }
  0x4c   : > { %p1321_p10 = por %p1320_p6, %p1319_p13 }
  0x4d   : > { %p1317_p2 = pneg %p1316_p1 }
  0x4e   : > { %p1323_p7 = por %p1322_p3, %p1321_p10 }
  0x50   : > { %p1324_p9 = pnand %p1323_p7, %p1317_p2 }
  0x52   : > { %1327 = shalt.err (!%p1324_p9)
}
  0x53   : > { %s1328_s30 = scalar_lea.vmem %s1594_s28, 1024  ;;  %s1419_s11 = smov [#allocation2]  }
  0x54   : > { %p1329_p12 = scmp.ne.s32.totalorder %s1594_s28, %s1328_s30  ;;  %s1333_s17 = sshll.u32 %s1419_s11, 4  ;;  %s1334_s17 = int_to_ptr.vmem [resolvable:$false] %s1333_s17 }
  0x55   : > { %s1335_s7 = scalar_lea.vmem %s1334_s17, 2048  ;;  %p1336_p4 = scmp.lt.s32.totalorder %s1594_s28, %s1334_s17 }
  0x56   : > { %p1331_p1 = pnand %p1329_p12, %p1315_p0  ;;  %p1337_p13 = scmp.lt.s32.totalorder %s1335_s7, %s1328_s30 }
  0x58   : > { %p1332_p5 = pneg %p1331_p1  ;;  %p1338_p6 = por %p1337_p13, %p1336_p4 }
  0x5a   : > { %p1339_p10 = pnand %p1338_p6, %p1332_p5 }
  0x5c   : > { %1342 = shalt.err (!%p1339_p10)
}
  0x5d   : > { %1176 = dma.hbm_to_vmem [thread:$0]  (!%p1596_p11), %s1592_s10, 1024, %s1594_s28, %s1600_s13, %s1417_s15, %s1417_s15, %s1418_s16  }
  0x5e   : > { %231 = sbr.rel (%p1493_p8) target bundleno = 622 (0x26e), region = 40  ;;  %s1634_s14 = sand.u32 (!%p1493_p8), 1, %s1405_s19  }
  0x5f   : > { %s942_s6 = sshll.u32 (!%p1493_p8), %s1634_s14, 6  ;;  %s234_s8 = scalar_lea.sflag (!%p1493_p8), [#allocation3], %s1634_s14 }
  0x60   : > { %s1640_s12 = scalar_lea.vmem (!%p1493_p8), [#allocation2], %s942_s6  ;;  %p1801_p4 = scmp.ne.s32.totalorder (!%p1493_p8), %s1794_s24, 0 }
  0x65   : > { %1388 = dma.done.wait (%p1801_p4), %s234_s8, 1024  }
  0x66   : > { %1390 = vsyncadd (%p1801_p4), %s234_s8, 4294966272  ;;  %p1802_p5 = scmp.eq.s32.totalorder %s1474_s22, 0 }
  0x68   : > { %1392 = dma.done.wait (%p1802_p5), [#allocation6], 2048   ;;  %p1803_p8 = pmov %p1802_p5 }
  0x69   : > { %v1225_v0 = vld [vmem:[#allocation5] sm:$0xff]   ;;  %v1226_v1 = vld [vmem:[#allocation5 + $0x8] sm:$0xff]   ;;  %v1227_v2 = vld [vmem:[#allocation5 + $0x10] sm:$0xff]   ;;  %s1706_s10 = scalar_lea.vmem [#allocation8], %s942_s6  ;;  %s1010_s28 = sshll.u32 %s1474_s22, 10 }
  0x6a   : > { %1394 = vsyncadd (%p1803_p8), [#allocation6], 4294965248  ;;  %1090 = vmatprep.subr.bf16.mxu0 %v1225_v0  ;;  %v1228_v3 = vld [vmem:[#allocation5 + $0x18] sm:$0xff]   ;;  %v1651_v4 = vld [vmem:[%s1640_s12] sm:$0xff]   ;;  %s841_s13 = sshll.u32 %s1706_s10, 4  ;;  %s1737_s11 = scalar_lea.hbm %s1790_s5, %s1010_s28  ;;  %s1739_s13 = int_to_ptr.vmem [resolvable:$true] %s841_s13 }
  0x6b   : > { %1091 = vmatpush3.bf16.msra.mxu0 %v1225_v0  ;;  %v1229_v5 = vld [vmem:[#allocation5 + $0x20] sm:$0xff]   ;;  %1106 = vmatprep.mubr.bf16.mxu0 %v1651_v4  ;;  %v1242_v7 = vld [vmem:[#allocation7 + $0x8] sm:$0xff]   ;;  %v1243_v8 = vld [vmem:[#allocation7 + $0x10] sm:$0xff]   ;;  %s828_s22 = scalar_lea.sflag [#allocation4], %s1634_s14  ;;  %s1343_s17 = scalar_lea.vmem %s1739_s13, 1024 }
  0x6c   : > { %1092 = vmatprep.subr.bf16.mxu0 %v1226_v1  ;;  %v1241_v6 = vld [vmem:[#allocation7] sm:$0xff]   ;;  %v1230_v9 = vld [vmem:[#allocation5 + $0x28] sm:$0xff]   ;;  %v1244_v10 = vld [vmem:[#allocation7 + $0x18] sm:$0xff]   ;;  %p1344_p11 = scmp.ne.s32.totalorder %s1739_s13, %s1343_s17  ;;  %p1804_p0 = scmp.ne.s32.totalorder %s1799_s23, 0 }
  0x6d   : > { %1122 = vmatprep.subr.bf16.mxu1 %v1241_v6  ;;  %v1231_v11 = vld [vmem:[#allocation5 + $0x30] sm:$0xff]   ;;  %v1245_v12 = vld [vmem:[#allocation7 + $0x20] sm:$0xff]   ;;  %v1232_v13 = vld [vmem:[#allocation5 + $0x38] sm:$0xff]   ;;  %s1420_s7 = smov [#allocation8]  }
  0x6e   : > { %1123 = vmatpush3.bf16.msra.mxu1 %v1241_v6  ;;  %v1655_v14 = vld [vmem:[%s1640_s12 + $0x8] sm:$0xff]   ;;  %v1658_v16 = vld [vmem:[%s1640_s12 + $0x10] sm:$0xff]   ;;  %v1663_v17 = vld [vmem:[%s1640_s12 + $0x18] sm:$0xff]   ;;  %p1345_p2 = pnand %p1344_p11, %p1804_p0  ;;  %s1347_s6 = sshll.u32 %s1420_s7, 4  ;;  %s1348_s6 = int_to_ptr.vmem [resolvable:$false] %s1347_s6 }
  0x6f   : > { %1093 = vmatpush3.bf16.msra.mxu0 %v1226_v1  ;;  %1124 = vmatprep.subr.bf16.mxu1 %v1242_v7  ;;  %v1246_v15 = vld [vmem:[#allocation7 + $0x28] sm:$0xff]   ;;  %v1666_v18 = vld [vmem:[%s1640_s12 + $0x20] sm:$0xff]   ;;  %v1674_v20 = vld [vmem:[%s1640_s12 + $0x30] sm:$0xff]   ;;  %s1349_s8 = scalar_lea.vmem %s1348_s6, 2048  ;;  %p1350_p7 = scmp.lt.s32.totalorder %s1739_s13, %s1348_s6 }
  0x70   : > { %1094 = vmatprep.subr.bf16.mxu0 %v1227_v2  ;;  %v1671_v19 = vld [vmem:[%s1640_s12 + $0x28] sm:$0xff]   ;;  %v1679_v21 = vld [vmem:[%s1640_s12 + $0x38] sm:$0xff]   ;;  %v1247_v22 = vld [vmem:[#allocation7 + $0x30] sm:$0xff]   ;;  %p1346_p3 = pneg %p1345_p2  ;;  %p1351_p9 = scmp.lt.s32.totalorder %s1349_s8, %s1343_s17 }
  0x71   : > { %v1248_v23 = vld [vmem:[#allocation7 + $0x38] sm:$0xff]   ;;  %v946_v24 = vld [vmem:[%s1787_s2] ss:$0 sm:$0xff] }
  0x72   : > { %1125 = vmatpush3.bf16.msra.mxu1 %v1242_v7  ;;  %p1352_p12 = por %p1351_p9, %p1350_p7 }
  0x73   : > { %1095 = vmatpush3.bf16.msra.mxu0 %v1227_v2  ;;  %1126 = vmatprep.subr.bf16.mxu1 %v1243_v8 }
  0x74   : > { %1096 = vmatprep.subr.bf16.mxu0 %v1228_v3  ;;  %p1353_p1 = pnand %p1352_p12, %p1346_p3 }
  0x76   : > { %1127 = vmatpush3.bf16.msra.mxu1 %v1243_v8 }
  0x77   : > { %1097 = vmatpush3.bf16.msra.mxu0 %v1228_v3  ;;  %1128 = vmatprep.subr.bf16.mxu1 %v1244_v10 }
  0x78   : > { %1098 = vmatprep.subr.bf16.mxu0 %v1229_v5 }
  0x7a   : > { %1129 = vmatpush3.bf16.msra.mxu1 %v1244_v10 }
  0x7b   : > { %1099 = vmatpush3.bf16.msra.mxu0 %v1229_v5  ;;  %1130 = vmatprep.subr.bf16.mxu1 %v1245_v12 }
  0x7c   : > { %1100 = vmatprep.subr.bf16.mxu0 %v1230_v9 }
  0x7e   : > { %1131 = vmatpush3.bf16.msra.mxu1 %v1245_v12 }
  0x7f   : > { %1101 = vmatpush3.bf16.msra.mxu0 %v1230_v9  ;;  %1132 = vmatprep.subr.bf16.mxu1 %v1246_v15 }
  0x80   : > { %1102 = vmatprep.subr.bf16.mxu0 %v1231_v11 }
  0x82   : > { %1133 = vmatpush3.bf16.msra.mxu1 %v1246_v15 }
  0x83   : > { %1103 = vmatpush3.bf16.msra.mxu0 %v1231_v11  ;;  %1134 = vmatprep.subr.bf16.mxu1 %v1247_v22 }
  0x84   : > { %1104 = vmatprep.subr.bf16.mxu0 %v1232_v13 }
  0x86   : > { %1135 = vmatpush3.bf16.msra.mxu1 %v1247_v22 }
  0x87   : > { %1105 = vmatpush3.bf16.msra.mxu0 %v1232_v13  ;;  %1136 = vmatprep.subr.bf16.mxu1 %v1248_v23 }
  0x8a   : > { %1107 = vmatmul.mubr.bf16.vlgmr.msra.gmra.mrb[0].mxu0 %v1655_v14  ;;  %1137 = vmatpush3.bf16.msra.mxu1 %v1248_v23 }
  0x8b   : > { %1110 = vmatprep.mubr.bf16.mxu0 %v1658_v16 }
  0x92   : > { %1111 = vmatmul.mubr.bf16.gmra.mrb[4].mxu0 %v1663_v17 }
  0x93   : > { %1114 = vmatprep.mubr.bf16.mxu0 %v1666_v18 }
  0x9a   : > { %1115 = vmatmul.mubr.bf16.gmra.mrb[8].mxu0 %v1671_v19 }
  0x9b   : > { %1118 = vmatprep.mubr.bf16.mxu0 %v1674_v20 }
  0xa2   : > { %1119 = vmatmul.mubr.bf16.gmra.mrb[12].mxu0 %v1679_v21 }
 0x15d   : > { %v1108_v25 = vpop.f32.mrb[0].mxu0 }
 0x15e   : > { %v469_v26 = vadd.f32 %v1108_v25, %v946_v24  ;;  %v460_v27 = vpop.f32.mrb[1].mxu0 }
 0x15f   : > { %v461_v28 = vadd.f32 %v946_v24, %v460_v27  ;;  %v1109_v29 = vpop.f32.mrb[2].mxu0  ;;  %v293_v27 = vunpack.c.l.bf16 %v1655_v14 }
 0x160   : > { %v472_v30 = vadd.f32 %v1109_v29, %v946_v24  ;;  %v463_v31 = vpop.f32.mrb[3].mxu0  ;;  %v525_v33 = vmax.f32 %v469_v26, 0.0  ;;  %v1688_v26 = vld [vmem:[%s1789_s4] ss:$0 sm:$0xff] }
 0x161   : > { %v464_v32 = vadd.f32 %v946_v24, %v463_v31  ;;  %v523_v35 = vmax.f32 %v461_v28, 0.0  ;;  %v291_v28 = vunpack.c.l.bf16 %v1651_v4  ;;  %v294_v31 = vunpack.c.h.bf16 %v1655_v14 }
 0x162   : > { %v526_v34 = vmax.f32 %v472_v30, 0.0 }
 0x163   : > { %v524_v36 = vmax.f32 %v464_v32, 0.0  ;;  %v292_v32 = vunpack.c.h.bf16 %v1651_v4 }
 0x164   : > { %v540_v37 = vpack.c.bf16 %v526_v34, %v525_v33 }
 0x165   : > { %v1112_v38 = vpop.f32.mrb[4].mxu0  ;;  %v539_v39 = vpack.c.bf16 %v524_v36, %v523_v35 }
 0x166   : > { %v485_v40 = vadd.f32 %v1112_v38, %v946_v24  ;;  %v476_v41 = vpop.f32.mrb[5].mxu0 }
 0x167   : > { %v477_v42 = vadd.f32 %v946_v24, %v476_v41  ;;  %v1113_v43 = vpop.f32.mrb[6].mxu0  ;;  %1138 = vmatprep.mubr.bf16.mxu1 %v539_v39 }
 0x168   : > { %v488_v44 = vadd.f32 %v1113_v43, %v946_v24  ;;  %v479_v45 = vpop.f32.mrb[7].mxu0  ;;  %1139 = vmatmul.mubr.bf16.vlgmr.msra.gmra.mrb[0].mxu1 %v540_v37  ;;  %v529_v47 = vmax.f32 %v485_v40, 0.0 }
 0x169   : > { %v480_v46 = vadd.f32 %v946_v24, %v479_v45  ;;  %v527_v49 = vmax.f32 %v477_v42, 0.0 }
 0x16a   : > { %v530_v48 = vmax.f32 %v488_v44, 0.0  ;;  %v297_v44 = vunpack.c.l.bf16 %v1663_v17 }
 0x16b   : > { %v528_v50 = vmax.f32 %v480_v46, 0.0  ;;  %v295_v46 = vunpack.c.l.bf16 %v1658_v16 }
 0x16c   : > { %v542_v51 = vpack.c.bf16 %v530_v48, %v529_v47 }
 0x16d   : > { %v541_v52 = vpack.c.bf16 %v528_v50, %v527_v49  ;;  %v1116_v53 = vpop.f32.mrb[8].mxu0  ;;  %v298_v50 = vunpack.c.h.bf16 %v1663_v17 }
 0x16e   : > { %v501_v54 = vadd.f32 %v1116_v53, %v946_v24  ;;  %v492_v55 = vpop.f32.mrb[9].mxu0 }
 0x16f   : > { %v493_v56 = vadd.f32 %v946_v24, %v492_v55  ;;  %v1117_v57 = vpop.f32.mrb[10].mxu0  ;;  %1142 = vmatprep.mubr.bf16.mxu1 %v541_v52 }
 0x170   : > { %v504_v58 = vadd.f32 %v1117_v57, %v946_v24  ;;  %v495_v59 = vpop.f32.mrb[11].mxu0  ;;  %1143 = vmatmul.mubr.bf16.gmra.mrb[4].mxu1 %v542_v51  ;;  %v533_v61 = vmax.f32 %v501_v54, 0.0  ;;  %v296_v54 = vunpack.c.h.bf16 %v1658_v16  ;;  %v301_v16 = vunpack.c.l.bf16 %v1671_v19 }
 0x171   : > { %v496_v60 = vadd.f32 %v946_v24, %v495_v59  ;;  %v531_v63 = vmax.f32 %v493_v56, 0.0 }
 0x172   : > { %v534_v62 = vmax.f32 %v504_v58, 0.0 }
 0x173   : > { %v532_v0 = vmax.f32 %v496_v60, 0.0 }
 0x174   : > { %v544_v1 = vpack.c.bf16 %v534_v62, %v533_v61 }
 0x175   : > { %v543_v2 = vpack.c.bf16 %v532_v0, %v531_v63  ;;  %v1120_v3 = vpop.f32.mrb[12].mxu0 }
 0x176   : > { %v517_v5 = vadd.f32 %v1120_v3, %v946_v24  ;;  %v508_v6 = vpop.f32.mrb[13].mxu0 }
 0x177   : > { %v509_v7 = vadd.f32 %v946_v24, %v508_v6  ;;  %v1121_v8 = vpop.f32.mrb[14].mxu0  ;;  %1146 = vmatprep.mubr.bf16.mxu1 %v543_v2  ;;  %v299_v2 = vunpack.c.l.bf16 %v1666_v18 }
 0x178   : > { %v520_v9 = vadd.f32 %v1121_v8, %v946_v24  ;;  %v511_v10 = vpop.f32.mrb[15].mxu0  ;;  %1147 = vmatmul.mubr.bf16.gmra.mrb[8].mxu1 %v544_v1  ;;  %v537_v12 = vmax.f32 %v517_v5, 0.0 }
 0x179   : > { %v512_v11 = vadd.f32 %v946_v24, %v511_v10  ;;  %v535_v15 = vmax.f32 %v509_v7, 0.0  ;;  %v302_v7 = vunpack.c.h.bf16 %v1671_v19 }
 0x17a   : > { %v538_v13 = vmax.f32 %v520_v9, 0.0 }
 0x17b   : > { %v536_v22 = vmax.f32 %v512_v11, 0.0  ;;  %v300_v11 = vunpack.c.h.bf16 %v1666_v18 }
 0x17c   : > { %v546_v23 = vpack.c.bf16 %v538_v13, %v537_v12 }
 0x17d   : > { %v545_v25 = vpack.c.bf16 %v536_v22, %v535_v15 }
 0x17f   : > { %1150 = vmatprep.mubr.bf16.mxu1 %v545_v25 }
 0x180   : > { %1151 = vmatmul.mubr.bf16.gmra.mrb[12].mxu1 %v546_v23 }
 0x23b   : > { %v1140_v29 = vpop.f32.mrb[0].mxu1 }
 0x23c   : > { %v661_v24 = vadd.f32 %v1140_v29, %v1688_v26  ;;  %v652_v30 = vpop.f32.mrb[1].mxu1  ;;  %v305_v29 = vunpack.c.l.bf16 %v1679_v21 }
 0x23d   : > { %v653_v33 = vadd.f32 %v1688_v26, %v652_v30  ;;  %v1141_v34 = vpop.f32.mrb[2].mxu1 }
 0x23e   : > { %v717_v35 = vadd.f32 %v661_v24, %v293_v27  ;;  %v664_v36 = vadd.f32 %v1141_v34, %v1688_v26  ;;  %v655_v37 = vpop.f32.mrb[3].mxu1 }
 0x23f   : > { %v715_v38 = vadd.f32 %v653_v33, %v291_v28  ;;  %v656_v39 = vadd.f32 %v1688_v26, %v655_v37 }
 0x240   : > { %v718_v40 = vadd.f32 %v664_v36, %v294_v31  ;;  %v733_v42 = vmax.f32 %v717_v35, 0.0  ;;  %v303_v31 = vunpack.c.l.bf16 %v1674_v20  ;;  %v306_v35 = vunpack.c.h.bf16 %v1679_v21 }
 0x241   : > { %v716_v41 = vadd.f32 %v656_v39, %v292_v32  ;;  %v731_v14 = vmax.f32 %v715_v38, 0.0  ;;  %v304_v39 = vunpack.c.h.bf16 %v1674_v20 }
 0x242   : > { %v734_v43 = vmax.f32 %v718_v40, 0.0 }
 0x243   : > { %v732_v45 = vmax.f32 %v716_v41, 0.0  ;;  %v1144_v4 = vpop.f32.mrb[4].mxu1 }
 0x244   : > { %v1019_v47 = vpack.c.bf16 %v734_v43, %v733_v42  ;;  %v677_v48 = vadd.f32 %v1144_v4, %v1688_v26  ;;  %v668_v49 = vpop.f32.mrb[5].mxu1 }
 0x245   : > { %v1014_v51 = vpack.c.bf16 %v732_v45, %v731_v14  ;;  %v669_v52 = vadd.f32 %v1688_v26, %v668_v49  ;;  %v1145_v53 = vpop.f32.mrb[6].mxu1 }
 0x246   : > { %1051 = vst [vmem:[%s1706_s10 + $0x8] sm:$0xff] %v1019_v47   ;;  %v721_v55 = vadd.f32 %v677_v48, %v297_v44  ;;  %v680_v56 = vadd.f32 %v1145_v53, %v1688_v26  ;;  %v671_v57 = vpop.f32.mrb[7].mxu1 }
 0x247   : > { %1015 = vst [vmem:[%s1706_s10] sm:$0xff] %v1014_v51   ;;  %v719_v58 = vadd.f32 %v669_v52, %v295_v46  ;;  %v672_v17 = vadd.f32 %v1688_v26, %v671_v57 }
 0x248   : > { %v722_v59 = vadd.f32 %v680_v56, %v298_v50  ;;  %v737_v61 = vmax.f32 %v721_v55, 0.0 }
 0x249   : > { %v720_v60 = vadd.f32 %v672_v17, %v296_v54  ;;  %v735_v63 = vmax.f32 %v719_v58, 0.0 }
 0x24a   : > { %v738_v62 = vmax.f32 %v722_v59, 0.0 }
 0x24b   : > { %v736_v0 = vmax.f32 %v720_v60, 0.0  ;;  %v1148_v1 = vpop.f32.mrb[8].mxu1 }
 0x24c   : > { %v1029_v3 = vpack.c.bf16 %v738_v62, %v737_v61  ;;  %v693_v5 = vadd.f32 %v1148_v1, %v1688_v26  ;;  %v684_v6 = vpop.f32.mrb[9].mxu1 }
 0x24d   : > { %v1024_v8 = vpack.c.bf16 %v736_v0, %v735_v63  ;;  %v685_v9 = vadd.f32 %v1688_v26, %v684_v6  ;;  %v1149_v10 = vpop.f32.mrb[10].mxu1 }
 0x24e   : > { %1053 = vst [vmem:[%s1706_s10 + $0x18] sm:$0xff] %v1029_v3   ;;  %v725_v12 = vadd.f32 %v693_v5, %v301_v16  ;;  %v696_v13 = vadd.f32 %v1149_v10, %v1688_v26  ;;  %v687_v15 = vpop.f32.mrb[11].mxu1 }
 0x24f   : > { %1052 = vst [vmem:[%s1706_s10 + $0x10] sm:$0xff] %v1024_v8   ;;  %v723_v22 = vadd.f32 %v685_v9, %v299_v2  ;;  %v688_v23 = vadd.f32 %v1688_v26, %v687_v15 }
 0x250   : > { %v726_v25 = vadd.f32 %v696_v13, %v302_v7  ;;  %v741_v28 = vmax.f32 %v725_v12, 0.0 }
 0x251   : > { %v724_v27 = vadd.f32 %v688_v23, %v300_v11  ;;  %v739_v24 = vmax.f32 %v723_v22, 0.0 }
 0x252   : > { %v742_v19 = vmax.f32 %v726_v25, 0.0 }
 0x253   : > { %v740_v30 = vmax.f32 %v724_v27, 0.0  ;;  %v1152_v18 = vpop.f32.mrb[12].mxu1 }
 0x254   : > { %v1039_v32 = vpack.c.bf16 %v742_v19, %v741_v28  ;;  %v709_v33 = vadd.f32 %v1152_v18, %v1688_v26  ;;  %v700_v34 = vpop.f32.mrb[13].mxu1 }
 0x255   : > { %v1034_v36 = vpack.c.bf16 %v740_v30, %v739_v24  ;;  %v701_v37 = vadd.f32 %v1688_v26, %v700_v34  ;;  %v1153_v38 = vpop.f32.mrb[14].mxu1 }
 0x256   : > { %1055 = vst [vmem:[%s1706_s10 + $0x28] sm:$0xff] %v1039_v32   ;;  %v729_v40 = vadd.f32 %v709_v33, %v305_v29  ;;  %v712_v41 = vadd.f32 %v1153_v38, %v1688_v26  ;;  %v703_v42 = vpop.f32.mrb[15].mxu1 }
 0x257   : > { %1054 = vst [vmem:[%s1706_s10 + $0x20] sm:$0xff] %v1034_v36   ;;  %v727_v43 = vadd.f32 %v701_v37, %v303_v31  ;;  %v704_v44 = vadd.f32 %v1688_v26, %v703_v42 }
 0x258   : > { %v730_v14 = vadd.f32 %v712_v41, %v306_v35  ;;  %v745_v45 = vmax.f32 %v729_v40, 0.0 }
 0x259   : > { %v728_v21 = vadd.f32 %v704_v44, %v304_v39  ;;  %v743_v20 = vmax.f32 %v727_v43, 0.0 }
 0x25a   : > { %v746_v4 = vmax.f32 %v730_v14, 0.0 }
 0x25b   : > { %v744_v46 = vmax.f32 %v728_v21, 0.0 }
 0x25c   : > { %v1049_v47 = vpack.c.bf16 %v746_v4, %v745_v45 }
 0x25d   : > { %v1044_v26 = vpack.c.bf16 %v744_v46, %v743_v20 }
 0x25e   : > { %1057 = vst [vmem:[%s1706_s10 + $0x38] sm:$0xff] %v1049_v47  }
 0x25f   : > { %1056 = vst [vmem:[%s1706_s10 + $0x30] sm:$0xff] %v1044_v26  }
 0x260   : > { %1356 = shalt.err (!%p1353_p1)
}
 0x261   : > { %s1357_s12 = scalar_lea.hbm %s1737_s11, 1024  ;;  %s1361_s15 = scalar_lea.hbm %s1790_s5, 2048 }
 0x262   : > { %p1358_p13 = scmp.ne.s32.totalorder %s1737_s11, %s1357_s12  ;;  %p1362_p4 = scmp.lt.u32.totalorder %s1737_s11, %s1790_s5 }
 0x263   : > { %p1363_p5 = scmp.lt.u32.totalorder %s1361_s15, %s1357_s12  ;;  %p1365_p11 = scmp.lt.u32.totalorder %s1357_s12, %s1737_s11 }
 0x264   : > { %p1359_p6 = pnand %p1358_p13, %p1804_p0 }
 0x265   : > { %p1364_p8 = por %p1363_p5, %p1362_p4 }
 0x266   : > { %p1360_p10 = pneg %p1359_p6 }
 0x267   : > { %p1366_p2 = por %p1365_p11, %p1364_p8 }
 0x269   : > { %p1367_p3 = pnand %p1366_p2, %p1360_p10 }
 0x26b   : > { %1370 = shalt.err (!%p1367_p3)
}
 0x26c   : > { %s1421_s28 = smov 64   ;;  %s1422_s9 = smov 4  }
 0x26d   : > { %1164 = dma.vmem_to_hbm [thread:$0]  (%p1804_p0), %s1739_s13, 1024, %s1737_s11, %s828_s22, %s1421_s28, %s1421_s28, %s1422_s9  }
 0x26e PF: > { %s856_s30 = sand.u32 1, %s1401_s18   ;;  %p1805_p7 = scmp.ne.s32.totalorder %s1795_s25, 0 }
 0x26f   : > { %p1806_p9 = scmp.ge.s32.totalorder %s1413_s21, 2  ;;  %s857_s17 = scalar_lea.sflag [#allocation4], %s856_s30 }
 0x271   : > { %p1178_p12 = pnand %p1806_p9, %p1805_p7 }
 0x273   : > { %1396 = dma.done.wait (!%p1178_p12), %s857_s17, 1024  }
 0x274   : > { %1398 = vsyncadd (!%p1178_p12), %s857_s17, 4294966272  ;;  %p19_p1 = scmp.ge.s32.totalorder %s1569_s29, 4   ;;  %s1807_s18 = smov %s1405_s19 }
 0x275   : > { %s1808_s19 = smov %s1409_s20  ;;  %s1809_s20 = smov %s1585_s27 }
 0x276   : > { %s1810_s21 = smov %s1569_s29  ;;  %21 = sbr.rel (!%p19_p1) target bundleno = 6 (0x6), region = 93 }
 0x27d   :  { %862 = vsyncpa [#allocation3], 1 }
 0x27e   :  { %864 = vsyncpa [#allocation3 + $0x1], 1 }
 0x27f   :  { %865 = vsyncpa [#allocation6], 1 }
 0x280   :  { %866 = vsyncpa [#allocation4], 1 }
 0x281   :  { %868 = vsyncpa [#allocation4 + $0x1], 1 }

</bundles_post_ra>
